<compile_context>
chip_gen: v7x
topology: tpu7x:2x2x1
jax: 0.10.0
libtpu: 0.0.40
codegen_flags: <defaults>
</compile_context>

<pallas_src>
import functools

import jax
import jax.numpy as jnp
from jax.experimental import pallas as pl
from jax.experimental.pallas import tpu as pltpu

C_IN = 16          # img_feature channels
C_MID = 32         # 16 * 2 hidden channels
C_OUT = 9          # 3x3 propagation filter weights
K1 = 9 * C_IN      # 144  (conv1 im2col depth)
K2 = 9 * C_MID     # 288  (conv2 im2col depth)


# --------------------------------------------------------------------------- #
# Parameter folding (shared by kernel wrapper and reference)
# --------------------------------------------------------------------------- #
def _fold_params(params, compute_dtype):
    """Fold eval-mode BN into conv1; lay weights out as (C_out, 9*C_in)."""
    w1, b1 = params["w1"], params["b1"]
    gamma, beta = params["gamma"], params["beta"]
    rmean, rvar = params["running_mean"], params["running_var"]
    w2 = params["w2"]
    eps = 1e-5

    scale = gamma / jnp.sqrt(rvar + eps)                              # (C_MID,)
    # PyTorch conv weight (out, in, kh, kw) -> (out, kh, kw, in) -> (out, 9*in)
    # column index = (ky*3 + kx) * C_in + c   (matches the im2col row order).
    w1mat = jnp.transpose(w1, (0, 2, 3, 1)).reshape(C_MID, K1) * scale[:, None]
    b1vec = (b1 - rmean) * scale + beta                               # (C_MID,)
    w2mat = jnp.transpose(w2, (0, 2, 3, 1)).reshape(C_OUT, K2)
    return (w1mat.astype(compute_dtype),
            b1vec.astype(jnp.float32),
            w2mat.astype(compute_dtype))


# --------------------------------------------------------------------------- #
# Pallas kernel (one tile of TB whole images per grid step)
# --------------------------------------------------------------------------- #
def _fastprop_kernel(p1_ref, w1_ref, b1_ref, w2_ref, dsh_ref, mask_ref,
                     out_ref, hpad_ref, *, W, pad):
    # p1_ref:   (144, T)  conv1 im2col patches (bf16), lanes = (image, pixel)
    # w1_ref:   (32, 144) folded conv1 weights (bf16)
    # b1_ref:   (32, 1)   folded conv1 bias (f32)
    # w2_ref:   (9, 288)  conv2 weights (bf16)
    # dsh_ref:  (9, T)    replicate-padded, pre-shifted depth planes (f32)
    # mask_ref: (9, T)    0/1 conv2 zero-padding masks (f32)
    # out_ref:  (1, T)    result depth (lane-dense)
    # hpad_ref: (32, pad + T + pad) f32 scratch: lane-padded conv1 activations
    T = p1_ref.shape[1]

    # ---- conv1 (+ folded BN) + ReLU: one K=144 MXU matmul, f32 accumulation
    acc1 = jnp.dot(w1_ref[...], p1_ref[...],
                   preferred_element_type=jnp.float32)        # (C_MID, T)
    hmid = jnp.maximum(acc1 + b1_ref[...], 0.0)               # f32

    # ---- flat lane-padded activation buffer (conv1 -> conv2 handoff).
    # Only the two `pad`-wide borders are zeroed (cheap, aligned stores); the
    # interior is overwritten every step.
    zero_border = jnp.zeros((C_MID, pad), jnp.float32)
    hpad_ref[:, :pad] = zero_border
    hpad_ref[:, pad + T:] = zero_border
    hpad_ref[:, pad:pad + T] = hmid

    # ---- conv2 im2col: 9 shifted lane-window reads, masked to reproduce the
    #      conv's zero padding (and image boundaries inside the tile).
    mask = mask_ref[...]                                      # (9, T)
    pieces = []
    for ky in range(3):
        for kx in range(3):
            k = ky * 3 + kx
            off = (ky - 1) * W + (kx - 1)
            shifted = hpad_ref[:, pad + off:pad + off + T]    # (C_MID, T) f32
            pieces.append((shifted * mask[k:k + 1, :]).astype(w2_ref.dtype))
    patches2 = jnp.concatenate(pieces, axis=0)                # (288, T) bf16

    # ---- conv2: one K=288 MXU matmul -> logits in (taps, pixels) layout
    logits = jnp.dot(w2_ref[...], patches2,
                     preferred_element_type=jnp.float32)      # (9, T)

    # ---- softmax over the 9 taps (sublane axis); pixels stay lane-dense
    m = jnp.max(logits, axis=0, keepdims=True)
    e = jnp.exp(logits - m)
    prob = e / jnp.sum(e, axis=0, keepdims=True)              # (9, T)

    # ---- weighted sum of the 9 pre-shifted depth planes (lane-dense FMAs)
    res = jnp.sum(dsh_ref[...] * prob, axis=0, keepdims=True)  # (1, T)
    out_ref[...] = res.astype(out_ref.dtype)


# --------------------------------------------------------------------------- #
# Wrapper: layout plumbing + pallas_call
# --------------------------------------------------------------------------- #
def _pick_batch_tile(B, P, target_lanes):
    """Largest whole-image batch tile whose lane width is 128-aligned."""
    legal = [tb for tb in range(1, B + 1)
             if B % tb == 0 and ((tb * P) % 128 == 0 or tb == B)]
    within = [tb for tb in legal if tb * P <= target_lanes]
    return max(within) if within else min(legal)


def fast_propagation(depth, img_feature, params, *,
                     compute_dtype=jnp.bfloat16, target_lanes=4096):
    """depth: (1, B, H, W), img_feature: (B, 16, H, W) -> (B, H, W)."""
    B, C, H, W = img_feature.shape
    P = H * W
    assert C == C_IN and depth.shape == (1, B, H, W)

    w1mat, b1vec, w2mat = _fold_params(params, compute_dtype)

    # conv1 im2col: rows = (tap, channel), lanes = (image, pixel) -> (144, B*P)
    fpad = jnp.pad(img_feature.astype(jnp.float32),
                   ((0, 0), (0, 0), (1, 1), (1, 1)))          # zero pad (conv1)
    fpad = jnp.transpose(fpad, (1, 0, 2, 3))                  # (C_IN, B, H+2, W+2)
    patches1 = jnp.concatenate(
        [fpad[:, :, ky:ky + H, kx:kx + W].reshape(C_IN, B * P)
         for ky in range(3) for kx in range(3)], axis=0).astype(compute_dtype)

    # 9 replicate-padded, pre-shifted depth planes: (9, B*P), lane-dense
    d = depth[0].astype(jnp.float32)                          # (B, H, W)
    dpad = jnp.pad(d, ((0, 0), (1, 1), (1, 1)), mode="edge")
    dsh = jnp.stack([dpad[:, ky:ky + H, kx:kx + W].reshape(B * P)
                     for ky in range(3) for kx in range(3)], axis=0)

    # 0/1 masks implementing conv2's zero padding, tiled per image: (9, B*P)
    ys, xs = jnp.arange(H), jnp.arange(W)
    mrows = []
    for ky in range(3):
        for kx in range(3):
            dy, dx = ky - 1, kx - 1
            vy = (ys + dy >= 0) & (ys + dy < H)
            vx = (xs + dx >= 0) & (xs + dx < W)
            mrows.append((vy[:, None] & vx[None, :]).reshape(P))
    mask = jnp.tile(jnp.stack(mrows, axis=0).astype(jnp.float32), (1, B))

    TB = _pick_batch_tile(B, P, target_lanes)
    T = TB * P
    grid = (B // TB,)
    pad = ((W + 1 + 127) // 128) * 128                        # lane halo, aligned

    kernel = functools.partial(_fastprop_kernel, W=W, pad=pad)
    out_flat = pl.pallas_call(
        kernel,
        out_shape=jax.ShapeDtypeStruct((1, B * P), jnp.float32),
        grid_spec=pltpu.PrefetchScalarGridSpec(
            num_scalar_prefetch=0,
            grid=grid,
            in_specs=[
                pl.BlockSpec((K1, T), lambda i: (0, i)),
                pl.BlockSpec((C_MID, K1), lambda i: (0, 0)),
                pl.BlockSpec((C_MID, 1), lambda i: (0, 0)),
                pl.BlockSpec((C_OUT, K2), lambda i: (0, 0)),
                pl.BlockSpec((C_OUT, T), lambda i: (0, i)),
                pl.BlockSpec((C_OUT, T), lambda i: (0, i)),
            ],
            out_specs=pl.BlockSpec((1, T), lambda i: (0, i)),
            scratch_shapes=[pltpu.VMEM((C_MID, 2 * pad + T), jnp.float32)],
        ),
        compiler_params=pltpu.CompilerParams(
            dimension_semantics=("parallel",),
            vmem_limit_bytes=48 * 1024 * 1024),
    )(patches1, w1mat, b1vec.reshape(C_MID, 1), w2mat, dsh, mask)

    return out_flat.reshape(B, H, W)


# --------------------------------------------------------------------------- #
# Pure-JAX reference (no Pallas) with matching matmul quantization
# --------------------------------------------------------------------------- #
def fast_propagation_ref(depth, img_feature, params, *,
                         compute_dtype=jnp.float32):
    B, C, H, W = img_feature.shape
    w1mat, b1vec, w2mat = _fold_params(params, compute_dtype)

    fpad = jnp.pad(img_feature.astype(jnp.float32),
                   ((0, 0), (0, 0), (1, 1), (1, 1))).astype(compute_dtype)
    acc1 = jnp.zeros((B, C_MID, H, W), jnp.float32)
    for ky in range(3):
        for kx in range(3):
            k = ky * 3 + kx
            acc1 = acc1 + jnp.einsum(
                "oc,bchw->bohw", w1mat[:, k * C_IN:(k + 1) * C_IN],
                fpad[:, :, ky:ky + H, kx:kx + W],
                preferred_element_type=jnp.float32)
    h1 = jnp.maximum(acc1 + b1vec[None, :, None, None], 0.0)
    hpad = jnp.pad(h1.astype(compute_dtype),
                   ((0, 0), (0, 0), (1, 1), (1, 1)))          # conv2 zero pad
    logits = jnp.zeros((B, C_OUT, H, W), jnp.float32)
    for ky in range(3):
        for kx in range(3):
            k = ky * 3 + kx
            logits = logits + jnp.einsum(
                "oc,bchw->bohw", w2mat[:, k * C_MID:(k + 1) * C_MID],
                hpad[:, :, ky:ky + H, kx:kx + W],
                preferred_element_type=jnp.float32)
    prob = jax.nn.softmax(logits, axis=1)                     # (B, 9, H, W)

    d = depth[0].astype(jnp.float32)
    dp = jnp.pad(d, ((0, 0), (1, 1), (1, 1)), mode="edge")    # replicate pad
    unf = jnp.stack([dp[:, ky:ky + H, kx:kx + W]
                     for ky in range(3) for kx in range(3)], axis=1)
    return jnp.sum(unf * prob, axis=1)                        # (B, H, W)


# --------------------------------------------------------------------------- #
if __name__ == "__main__":
    key = jax.random.PRNGKey(0)
    ks = jax.random.split(key, 8)

    B, H, W = 2, 16, 16

    params = {
        "w1": 0.1 * jax.random.normal(ks[0], (C_MID, C_IN, 3, 3), jnp.float32),
        "b1": 0.1 * jax.random.normal(ks[1], (C_MID,), jnp.float32),
        "gamma": 1.0 + 0.1 * jax.random.normal(ks[2], (C_MID,), jnp.float32),
        "beta": 0.1 * jax.random.normal(ks[3], (C_MID,), jnp.float32),
        "running_mean": 0.1 * jax.random.normal(ks[4], (C_MID,), jnp.float32),
        "running_var": 1.0 + 0.1 * jnp.abs(
            jax.random.normal(ks[5], (C_MID,), jnp.float32)),
        "w2": 0.1 * jax.random.normal(ks[6], (C_OUT, C_MID, 3, 3), jnp.float32),
    }

    k_d, k_f = jax.random.split(ks[7])
    depth = jax.random.uniform(k_d, (1, B, H, W), jnp.float32) * 5.0
    img_feature = jax.random.normal(k_f, (B, C_IN, H, W), jnp.float32)

    out = fast_propagation(depth, img_feature, params,
                           compute_dtype=jnp.bfloat16)
    out = jax.block_until_ready(out)
    assert out.shape == (B, H, W)

    # Reference emulating the same bf16 matmul inputs / f32 accumulation; the
    # only remaining differences are accumulation order and exp implementation.
    ref = fast_propagation_ref(depth, img_feature, params,
                               compute_dtype=jnp.bfloat16)
    err = jnp.max(jnp.abs(out - ref))
    assert jnp.allclose(out, ref, rtol=1e-3, atol=1e-3), f"max abs err = {err}"

    print("KERNEL_OK")
</pallas_src>

<mosaic_0001>
module attributes {stable_mosaic.version = 11 : i64} {
  func.func @_fastprop_kernel(%arg0: i32, %arg1: memref<144x512xbf16, #tpu.memory_space<vmem>>, %arg2: memref<32x144xbf16, #tpu.memory_space<vmem>>, %arg3: memref<32x1xf32, #tpu.memory_space<vmem>>, %arg4: memref<9x288xbf16, #tpu.memory_space<vmem>>, %arg5: memref<9x512xf32, #tpu.memory_space<vmem>>, %arg6: memref<9x512xf32, #tpu.memory_space<vmem>>, %arg7: memref<1x512xf32, #tpu.memory_space<vmem>>, %arg8: memref<32x768xf32, #tpu.memory_space<vmem>>) attributes {dimension_semantics = [#tpu.dimension_semantics<parallel>], iteration_bounds = array<i64: 1>, scalar_prefetch = 0 : i64, scratch_operands = 1 : i64, tpu.core_type = #tpu.core_type<tc>, window_params = [{transform_indices = @transform_0, window_bounds = array<i64: 144, 512>}, {pipeline_mode = #tpu.pipeline_mode<synchronous>, transform_indices = @transform_1, window_bounds = array<i64: 32, 144>}, {pipeline_mode = #tpu.pipeline_mode<synchronous>, transform_indices = @transform_2, window_bounds = array<i64: 32, 1>}, {pipeline_mode = #tpu.pipeline_mode<synchronous>, transform_indices = @transform_3, window_bounds = array<i64: 9, 288>}, {transform_indices = @transform_4, window_bounds = array<i64: 9, 512>}, {transform_indices = @transform_5, window_bounds = array<i64: 9, 512>}, {transform_indices = @transform_6, window_bounds = array<i64: 1, 512>}]} {
    %c0 = arith.constant 0 : index
    %c0_0 = arith.constant 0 : index
    %0 = vector.load %arg2[%c0, %c0_0] : memref<32x144xbf16, #tpu.memory_space<vmem>>, vector<32x144xbf16>
    %c0_1 = arith.constant 0 : index
    %c0_2 = arith.constant 0 : index
    %1 = vector.load %arg1[%c0_1, %c0_2] : memref<144x512xbf16, #tpu.memory_space<vmem>>, vector<144x512xbf16>
    %cst = arith.constant dense<0.000000e+00> : vector<32x512xf32>
    %2 = tpu.matmul %0, %1, %cst {dimension_numbers = #tpu.dot_dimension_numbers<[1], [0], [0], [1], [0, 0, 1, 1], [], []>} : vector<32x144xbf16>, vector<144x512xbf16>, vector<32x512xf32> -> vector<32x512xf32>
    %c0_3 = arith.constant 0 : index
    %c0_4 = arith.constant 0 : index
    %3 = vector.load %arg3[%c0_3, %c0_4] : memref<32x1xf32, #tpu.memory_space<vmem>>, vector<32x1xf32>
    %4 = vector.broadcast %3 : vector<32x1xf32> to vector<32x512xf32>
    %5 = arith.addf %2, %4 : vector<32x512xf32>
    %cst_5 = arith.constant 0.000000e+00 : f32
    %6 = vector.broadcast %cst_5 : f32 to vector<32x512xf32>
    %7 = arith.maximumf %5, %6 : vector<32x512xf32>
    %cst_6 = arith.constant 0.000000e+00 : f32
    %8 = vector.broadcast %cst_6 : f32 to vector<32x128xf32>
    %c0_7 = arith.constant 0 : index
    %c0_8 = arith.constant 0 : index
    %9 = vector.load %arg8[%c0_7, %c0_8] : memref<32x768xf32, #tpu.memory_space<vmem>>, vector<32x128xf32>
    tpu.vector_store %arg8[%c0_7, %c0_8], %8 {strides = array<i32>} : memref<32x768xf32, #tpu.memory_space<vmem>>, vector<32x128xf32>,
    %c0_9 = arith.constant 0 : index
    %c640 = arith.constant 640 : index
    %10 = vector.load %arg8[%c0_9, %c640] : memref<32x768xf32, #tpu.memory_space<vmem>>, vector<32x128xf32>
    tpu.vector_store %arg8[%c0_9, %c640], %8 {strides = array<i32>} : memref<32x768xf32, #tpu.memory_space<vmem>>, vector<32x128xf32>,
    %c0_10 = arith.constant 0 : index
    %c128 = arith.constant 128 : index
    %11 = vector.load %arg8[%c0_10, %c128] : memref<32x768xf32, #tpu.memory_space<vmem>>, vector<32x512xf32>
    tpu.vector_store %arg8[%c0_10, %c128], %7 {strides = array<i32>} : memref<32x768xf32, #tpu.memory_space<vmem>>, vector<32x512xf32>,
    %c0_11 = arith.constant 0 : index
    %c0_12 = arith.constant 0 : index
    %12 = vector.load %arg6[%c0_11, %c0_12] : memref<9x512xf32, #tpu.memory_space<vmem>>, vector<9x512xf32>
    %c0_13 = arith.constant 0 : index
    %c111 = arith.constant 111 : index
    %13 = vector.load %arg8[%c0_13, %c111] : memref<32x768xf32, #tpu.memory_space<vmem>>, vector<32x512xf32>
    %14 = vector.extract_strided_slice %12 {offsets = [0, 0], sizes = [1, 512], strides = [1, 1]} : vector<9x512xf32> to vector<1x512xf32>
    %15 = vector.broadcast %14 : vector<1x512xf32> to vector<32x512xf32>
    %16 = arith.mulf %13, %15 : vector<32x512xf32>
    %17 = arith.truncf %16 : vector<32x512xf32> to vector<32x512xbf16>
    %c0_14 = arith.constant 0 : index
    %c112 = arith.constant 112 : index
    %18 = vector.load %arg8[%c0_14, %c112] : memref<32x768xf32, #tpu.memory_space<vmem>>, vector<32x512xf32>
    %19 = vector.extract_strided_slice %12 {offsets = [1, 0], sizes = [1, 512], strides = [1, 1]} : vector<9x512xf32> to vector<1x512xf32>
    %20 = vector.broadcast %19 : vector<1x512xf32> to vector<32x512xf32>
    %21 = arith.mulf %18, %20 : vector<32x512xf32>
    %22 = arith.truncf %21 : vector<32x512xf32> to vector<32x512xbf16>
    %c0_15 = arith.constant 0 : index
    %c113 = arith.constant 113 : index
    %23 = vector.load %arg8[%c0_15, %c113] : memref<32x768xf32, #tpu.memory_space<vmem>>, vector<32x512xf32>
    %24 = vector.extract_strided_slice %12 {offsets = [2, 0], sizes = [1, 512], strides = [1, 1]} : vector<9x512xf32> to vector<1x512xf32>
    %25 = vector.broadcast %24 : vector<1x512xf32> to vector<32x512xf32>
    %26 = arith.mulf %23, %25 : vector<32x512xf32>
    %27 = arith.truncf %26 : vector<32x512xf32> to vector<32x512xbf16>
    %c0_16 = arith.constant 0 : index
    %c127 = arith.constant 127 : index
    %28 = vector.load %arg8[%c0_16, %c127] : memref<32x768xf32, #tpu.memory_space<vmem>>, vector<32x512xf32>
    %29 = vector.extract_strided_slice %12 {offsets = [3, 0], sizes = [1, 512], strides = [1, 1]} : vector<9x512xf32> to vector<1x512xf32>
    %30 = vector.broadcast %29 : vector<1x512xf32> to vector<32x512xf32>
    %31 = arith.mulf %28, %30 : vector<32x512xf32>
    %32 = arith.truncf %31 : vector<32x512xf32> to vector<32x512xbf16>
    %c0_17 = arith.constant 0 : index
    %c128_18 = arith.constant 128 : index
    %33 = vector.load %arg8[%c0_17, %c128_18] : memref<32x768xf32, #tpu.memory_space<vmem>>, vector<32x512xf32>
    %34 = vector.extract_strided_slice %12 {offsets = [4, 0], sizes = [1, 512], strides = [1, 1]} : vector<9x512xf32> to vector<1x512xf32>
    %35 = vector.broadcast %34 : vector<1x512xf32> to vector<32x512xf32>
    %36 = arith.mulf %33, %35 : vector<32x512xf32>
    %37 = arith.truncf %36 : vector<32x512xf32> to vector<32x512xbf16>
    %c0_19 = arith.constant 0 : index
    %c129 = arith.constant 129 : index
    %38 = vector.load %arg8[%c0_19, %c129] : memref<32x768xf32, #tpu.memory_space<vmem>>, vector<32x512xf32>
    %39 = vector.extract_strided_slice %12 {offsets = [5, 0], sizes = [1, 512], strides = [1, 1]} : vector<9x512xf32> to vector<1x512xf32>
    %40 = vector.broadcast %39 : vector<1x512xf32> to vector<32x512xf32>
    %41 = arith.mulf %38, %40 : vector<32x512xf32>
    %42 = arith.truncf %41 : vector<32x512xf32> to vector<32x512xbf16>
    %c0_20 = arith.constant 0 : index
    %c143 = arith.constant 143 : index
    %43 = vector.load %arg8[%c0_20, %c143] : memref<32x768xf32, #tpu.memory_space<vmem>>, vector<32x512xf32>
    %44 = vector.extract_strided_slice %12 {offsets = [6, 0], sizes = [1, 512], strides = [1, 1]} : vector<9x512xf32> to vector<1x512xf32>
    %45 = vector.broadcast %44 : vector<1x512xf32> to vector<32x512xf32>
    %46 = arith.mulf %43, %45 : vector<32x512xf32>
    %47 = arith.truncf %46 : vector<32x512xf32> to vector<32x512xbf16>
    %c0_21 = arith.constant 0 : index
    %c144 = arith.constant 144 : index
    %48 = vector.load %arg8[%c0_21, %c144] : memref<32x768xf32, #tpu.memory_space<vmem>>, vector<32x512xf32>
    %49 = vector.extract_strided_slice %12 {offsets = [7, 0], sizes = [1, 512], strides = [1, 1]} : vector<9x512xf32> to vector<1x512xf32>
    %50 = vector.broadcast %49 : vector<1x512xf32> to vector<32x512xf32>
    %51 = arith.mulf %48, %50 : vector<32x512xf32>
    %52 = arith.truncf %51 : vector<32x512xf32> to vector<32x512xbf16>
    %c0_22 = arith.constant 0 : index
    %c145 = arith.constant 145 : index
    %53 = vector.load %arg8[%c0_22, %c145] : memref<32x768xf32, #tpu.memory_space<vmem>>, vector<32x512xf32>
    %54 = vector.extract_strided_slice %12 {offsets = [8, 0], sizes = [1, 512], strides = [1, 1]} : vector<9x512xf32> to vector<1x512xf32>
    %55 = vector.broadcast %54 : vector<1x512xf32> to vector<32x512xf32>
    %56 = arith.mulf %53, %55 : vector<32x512xf32>
    %57 = arith.truncf %56 : vector<32x512xf32> to vector<32x512xbf16>
    %58 = tpu.concatenate %17, %22, %27, %32, %37, %42, %47, %52, %57 in 0 : vector<32x512xbf16>, vector<32x512xbf16>, vector<32x512xbf16>, vector<32x512xbf16>, vector<32x512xbf16>, vector<32x512xbf16>, vector<32x512xbf16>, vector<32x512xbf16>, vector<32x512xbf16> -> vector<288x512xbf16>
    %c0_23 = arith.constant 0 : index
    %c0_24 = arith.constant 0 : index
    %59 = vector.load %arg4[%c0_23, %c0_24] : memref<9x288xbf16, #tpu.memory_space<vmem>>, vector<9x288xbf16>
    %cst_25 = arith.constant dense<0.000000e+00> : vector<9x512xf32>
    %60 = tpu.matmul %59, %58, %cst_25 {dimension_numbers = #tpu.dot_dimension_numbers<[1], [0], [0], [1], [0, 0, 1, 1], [], []>} : vector<9x288xbf16>, vector<288x512xbf16>, vector<9x512xf32> -> vector<9x512xf32>
    %cst_26 = arith.constant dense<0xFF800000> : vector<512xf32>
    %61 = vector.multi_reduction <maximumf>, %60, %cst_26 [0] : vector<9x512xf32> to vector<512xf32>
    %62 = vector.shape_cast %61 : vector<512xf32> to vector<1x512xf32>
    %63 = vector.broadcast %62 : vector<1x512xf32> to vector<9x512xf32>
    %64 = arith.subf %60, %63 : vector<9x512xf32>
    %65 = math.exp %64 : vector<9x512xf32>
    %cst_27 = arith.constant dense<0.000000e+00> : vector<512xf32>
    %66 = vector.multi_reduction <add>, %65, %cst_27 [0] : vector<9x512xf32> to vector<512xf32>
    %67 = vector.shape_cast %66 : vector<512xf32> to vector<1x512xf32>
    %68 = vector.broadcast %67 : vector<1x512xf32> to vector<9x512xf32>
    %69 = arith.divf %65, %68 : vector<9x512xf32>
    %c0_28 = arith.constant 0 : index
    %c0_29 = arith.constant 0 : index
    %70 = vector.load %arg5[%c0_28, %c0_29] : memref<9x512xf32, #tpu.memory_space<vmem>>, vector<9x512xf32>
    %71 = arith.mulf %70, %69 : vector<9x512xf32>
    %cst_30 = arith.constant dense<0.000000e+00> : vector<512xf32>
    %72 = vector.multi_reduction <add>, %71, %cst_30 [0] : vector<9x512xf32> to vector<512xf32>
    %73 = vector.shape_cast %72 : vector<512xf32> to vector<1x512xf32>
    %c0_31 = arith.constant 0 : index
    %c0_32 = arith.constant 0 : index
    %74 = vector.load %arg7[%c0_31, %c0_32] : memref<1x512xf32, #tpu.memory_space<vmem>>, vector<1x512xf32>
    tpu.vector_store %arg7[%c0_31, %c0_32], %73 {strides = array<i32>} : memref<1x512xf32, #tpu.memory_space<vmem>>, vector<1x512xf32>,
    return
  }
  func.func @transform_0(%arg0: i32) -> (i32, i32) {
    %c0_i32 = arith.constant 0 : i32
    %c0_i32_0 = arith.constant 0 : i32
    return %c0_i32, %arg0 : i32, i32
  }
  func.func @transform_1(%arg0: i32) -> (i32, i32) {
    %c0_i32 = arith.constant 0 : i32
    %c0_i32_0 = arith.constant 0 : i32
    %c0_i32_1 = arith.constant 0 : i32
    return %c0_i32, %c0_i32_0 : i32, i32
  }
  func.func @transform_2(%arg0: i32) -> (i32, i32) {
    %c0_i32 = arith.constant 0 : i32
    %c0_i32_0 = arith.constant 0 : i32
    %c0_i32_1 = arith.constant 0 : i32
    return %c0_i32, %c0_i32_0 : i32, i32
  }
  func.func @transform_3(%arg0: i32) -> (i32, i32) {
    %c0_i32 = arith.constant 0 : i32
    %c0_i32_0 = arith.constant 0 : i32
    %c0_i32_1 = arith.constant 0 : i32
    return %c0_i32, %c0_i32_0 : i32, i32
  }
  func.func @transform_4(%arg0: i32) -> (i32, i32) {
    %c0_i32 = arith.constant 0 : i32
    %c0_i32_0 = arith.constant 0 : i32
    return %c0_i32, %arg0 : i32, i32
  }
  func.func @transform_5(%arg0: i32) -> (i32, i32) {
    %c0_i32 = arith.constant 0 : i32
    %c0_i32_0 = arith.constant 0 : i32
    return %c0_i32, %arg0 : i32, i32
  }
  func.func @transform_6(%arg0: i32) -> (i32, i32) {
    %c0_i32 = arith.constant 0 : i32
    %c0_i32_0 = arith.constant 0 : i32
    return %c0_i32, %arg0 : i32, i32
  }
}

</mosaic_0001>

<bundles_post_ra>
// kernel: tpu_custom_call.1
= control target key start
LH: loop header
LB: loop body
LE: loop exit
PB: predicated region body
PF: predicated region fallthrough
CT: control target
= control target key end

     0   :  { %11 = vsyncpa [#allocation4], 0  ;;  %s4462_s0 = inlined_call_operand.hbm [shape: bf16[144,512], index: 0, kind: input, shape index: {}]   ;;  %s4463_s1 = inlined_call_operand.vmem [shape: bf16[32,144], index: 1, kind: input, shape index: {}]   ;;  %s4464_s2 = inlined_call_operand.vmem [shape: f32[32,1], index: 2, kind: input, shape index: {}]   ;;  %s4465_s3 = inlined_call_operand.hbm [shape: bf16[9,288], index: 3, kind: input, shape index: {}]   ;;  %s4466_s4 = inlined_call_operand.hbm [shape: f32[9,512], index: 4, kind: input, shape index: {}]   ;;  %s4467_s5 = inlined_call_operand.hbm [shape: f32[9,512], index: 5, kind: input, shape index: {}]   ;;  %s4468_s6 = inlined_call_operand.hbm [shape: f32[1,512], index: 6, kind: output, shape index: {}]  }
   0x1   :  { %12 = vsyncpa [#allocation7], 0 }
   0x2   :  { %13 = vsyncpa [#allocation10], 0 }
   0x3   :  { %14 = vsyncpa [#allocation5], 0  ;;  %s2446_s21 = smov [#allocation6]   ;;  %s2328_s25 = scalar_lea.hbm %s4465_s3, 384 }
   0x4   :  { %s36_s22 = sshll.u32 %s2446_s21, 4  ;;  %p2329_p0 = scmp.ne.s32.totalorder %s4465_s3, %s2328_s25  ;;  %s37_s22 = int_to_ptr.vmem [resolvable:$true] %s36_s22 }
   0x5   :  { %p2332_p1 = scmp.lt.u32.totalorder %s2328_s25, %s4465_s3 }
   0x7   :  { %p2334_p2 = pnand %p2332_p1, %p2329_p0 }
   0x9   :  { %2337 = shalt.err (!%p2334_p2)
}
   0xa   :  { %s2338_s30 = scalar_lea.vmem %s37_s22, 384  ;;  %p2343_p4 = scmp.lt.s32.totalorder %s37_s22, %s37_s22 }
   0xb   :  { %p2339_p3 = scmp.ne.s32.totalorder %s37_s22, %s2338_s30  ;;  %p2344_p5 = scmp.lt.s32.totalorder %s2338_s30, %s2338_s30 }
   0xd   :  { %p2345_p6 = por %p2344_p5, %p2343_p4 }
   0xf   :  { %p2346_p7 = pnand %p2345_p6, %p2339_p3 }
  0x11   :  { %2349 = shalt.err (!%p2346_p7)
}
  0x12   :  { %s2447_s7 = smov 192   ;;  %s2448_s8 = smov 12  }
  0x13   :  { %42 = dma.hbm_to_vmem [thread:$0]  %s4465_s3, 384, %s37_s22, [#allocation7], %s2447_s7, %s2447_s7, %s2448_s8  }
  0x14   :  { %s2449_s11 = smov [#allocation3]   ;;  %s2350_s15 = scalar_lea.hbm %s4462_s0, 4608 }
  0x15   :  { %s20_s12 = sshll.u32 %s2449_s11, 4  ;;  %p2351_p8 = scmp.ne.s32.totalorder %s4462_s0, %s2350_s15  ;;  %s21_s12 = int_to_ptr.vmem [resolvable:$true] %s20_s12 }
  0x16   :  { %p2354_p9 = scmp.lt.u32.totalorder %s2350_s15, %s4462_s0 }
  0x18   :  { %p2356_p10 = pnand %p2354_p9, %p2351_p8 }
  0x1a   :  { %2359 = shalt.err (!%p2356_p10)
}
  0x1b   :  { %s2360_s20 = scalar_lea.vmem %s21_s12, 4608  ;;  %p2365_p12 = scmp.lt.s32.totalorder %s21_s12, %s21_s12 }
  0x1c   :  { %p2361_p11 = scmp.ne.s32.totalorder %s21_s12, %s2360_s20  ;;  %p2366_p13 = scmp.lt.s32.totalorder %s2360_s20, %s2360_s20 }
  0x1e   :  { %p2367_p0 = por %p2366_p13, %p2365_p12 }
  0x20   :  { %p2368_p1 = pnand %p2367_p0, %p2361_p11 }
  0x22   :  { %2371 = shalt.err (!%p2368_p1)
}
  0x23   :  { %s2450_s3 = smov 256   ;;  %s2451_s21 = smov 16  }
  0x24   :  { %26 = dma.hbm_to_vmem [thread:$0]  %s4462_s0, 4608, %s21_s12, [#allocation4], %s2450_s3, %s2450_s3, %s2451_s21  }
  0x25   :  { %s2452_s24 = smov [#allocation8]   ;;  %s2372_s28 = scalar_lea.hbm %s4466_s4, 1024 }
  0x26   :  { %s48_s25 = sshll.u32 %s2452_s24, 4  ;;  %p2373_p2 = scmp.ne.s32.totalorder %s4466_s4, %s2372_s28  ;;  %s49_s25 = int_to_ptr.vmem [resolvable:$true] %s48_s25 }
  0x27   :  { %p2376_p3 = scmp.lt.u32.totalorder %s2372_s28, %s4466_s4 }
  0x29   :  { %p2378_p4 = pnand %p2376_p3, %p2373_p2 }
  0x2b   :  { %2381 = shalt.err (!%p2378_p4)
}
  0x2c   :  { %s2382_s9 = scalar_lea.vmem %s49_s25, 1024  ;;  %p2387_p6 = scmp.lt.s32.totalorder %s49_s25, %s49_s25 }
  0x2d   :  { %p2383_p5 = scmp.ne.s32.totalorder %s49_s25, %s2382_s9  ;;  %p2388_p7 = scmp.lt.s32.totalorder %s2382_s9, %s2382_s9 }
  0x2f   :  { %p2389_p8 = por %p2388_p7, %p2387_p6 }
  0x31   :  { %p2390_p9 = pnand %p2389_p8, %p2383_p5 }
  0x33   :  { %2393 = shalt.err (!%p2390_p9)
}
  0x34   :  { %s2453_s0 = smov 512   ;;  %s2454_s10 = smov 32  }
  0x35   :  { %54 = dma.hbm_to_vmem [thread:$0]  %s4466_s4, 1024, %s49_s25, [#allocation7], %s2453_s0, %s2453_s0, %s2454_s10  }
  0x36   :  { %s2455_s13 = smov [#allocation9]   ;;  %s2394_s17 = scalar_lea.hbm %s4467_s5, 1024 }
  0x37   :  { %s60_s14 = sshll.u32 %s2455_s13, 4  ;;  %p2395_p10 = scmp.ne.s32.totalorder %s4467_s5, %s2394_s17  ;;  %s61_s14 = int_to_ptr.vmem [resolvable:$true] %s60_s14 }
  0x38   :  { %p2398_p11 = scmp.lt.u32.totalorder %s2394_s17, %s4467_s5 }
  0x3a   :  { %p2400_p12 = pnand %p2398_p11, %p2395_p10 }
  0x3c   :  { %2403 = shalt.err (!%p2400_p12)
}
  0x3d   :  { %s2404_s22 = scalar_lea.vmem %s61_s14, 1024  ;;  %p2409_p0 = scmp.lt.s32.totalorder %s61_s14, %s61_s14 }
  0x3e   :  { %p2405_p13 = scmp.ne.s32.totalorder %s61_s14, %s2404_s22  ;;  %p2410_p1 = scmp.lt.s32.totalorder %s2404_s22, %s2404_s22 }
  0x40   :  { %p2411_p2 = por %p2410_p1, %p2409_p0 }
  0x42   :  { %p2412_p3 = pnand %p2411_p2, %p2405_p13 }
  0x44   :  { %2415 = shalt.err (!%p2412_p3)
}
  0x45   :  { %66 = dma.hbm_to_vmem [thread:$0]  %s4467_s5, 1024, %s61_s14, [#allocation10], %s2453_s0, %s2453_s0, %s2454_s10  }
  0x46   :  { %2438 = dma.done.wait [#allocation4], 4608  }
  0x47   :  { %2439 = vsyncadd [#allocation4], 4294962688 }
  0x48   :  { %2440 = dma.done.wait [#allocation7], 1408  }
  0x49   :  { %2441 = vsyncadd [#allocation7], 4294965888 }
  0x4a   :  { %2442 = dma.done.wait [#allocation10], 1024  }
  0x4b   :  { %2443 = vsyncadd [#allocation10], 4294966272  ;;  %v4470_v0 = vmov 0   ;;  %v122_v1 = vld [vmem:[%s4464_s2 + $0x10] sm:$0xff]  ;;  %v2242_v3 = vld [vmem:[#allocation3 + $0xc] ss:$16 sps:$4 sm:$0xff]   ;;  %v4469_v7 = vlaneseq }
  0x4c   :  { %2239 = vset.pattern.permute.xlu1 %v4470_v0  ;;  %2238 = vset.pattern.permute.xlu0 %v4470_v0  ;;  %v2240_v2 = vld [vmem:[#allocation3 + $0x4] ss:$16 sps:$4 sm:$0xff]   ;;  %v2244_v4 = vld [vmem:[#allocation3] ss:$16 sps:$4 sm:$0xff]   ;;  %v2245_v5 = vld [vmem:[#allocation3 + $0x8] ss:$16 sps:$4 sm:$0xff]  }
  0x4d   :  { %136 = vperm.xlu1 %2239, %v122_v1   ;;  %349 = vmatprep.subr.bf16.mxu0 %v2240_v2  ;;  %v123_v6 = vld [vmem:[%s4464_s2 + $0x18] sm:$0xff]  ;;  %v2246_v8 = vld [vmem:[#allocation3 + $0x24] ss:$16 sps:$4 sm:$0xff]   ;;  %v2250_v10 = vld [vmem:[#allocation3 + $0x20] ss:$16 sps:$4 sm:$0xff]   ;;  %v2564_v14 = vshrl.u32 %v4469_v7, 7 }
  0x4e   :  { %402 = vmatprep.subr.bf16.mxu1 %v2242_v3  ;;  %350 = vmatpush1.bf16.msra.mxu0 %v2244_v4  ;;  %v2248_v9 = vld [vmem:[#allocation3 + $0x2c] ss:$16 sps:$4 sm:$0xff]   ;;  %v2251_v11 = vld [vmem:[#allocation3 + $0x28] ss:$16 sps:$4 sm:$0xff]   ;;  %v2252_v12 = vld [vmem:[#allocation3 + $0x44] ss:$16 sps:$4 sm:$0xff]  }
  0x4f   :  { %403 = vmatpush1.bf16.msra.mxu1 %v2245_v5  ;;  %351 = vmatprep.subr.bf16.mxu0 %v2246_v8  ;;  %v2254_v13 = vld [vmem:[#allocation3 + $0x4c] ss:$16 sps:$4 sm:$0xff]   ;;  %4552 = vst [vmem:[#allocation16_spill] sm:$0xff] %v2564_v14  ;;  %v2256_v15 = vld [vmem:[#allocation3 + $0x40] ss:$16 sps:$4 sm:$0xff]   ;;  %v2567_v19 = vsub.s32 1, %v2564_v14 }
  0x50   :  { %404 = vmatprep.subr.bf16.mxu1 %v2248_v9  ;;  %v2257_v16 = vld [vmem:[#allocation3 + $0x48] ss:$16 sps:$4 sm:$0xff]   ;;  %v2258_v17 = vld [vmem:[#allocation3 + $0x64] ss:$16 sps:$4 sm:$0xff]   ;;  %v2260_v18 = vld [vmem:[#allocation3 + $0x6c] ss:$16 sps:$4 sm:$0xff]  }
  0x51   :  { %141 = vperm.xlu1 %2239, %v123_v6   ;;  %v2262_v20 = vld [vmem:[#allocation3 + $0x60] ss:$16 sps:$4 sm:$0xff]   ;;  %v2263_v21 = vld [vmem:[#allocation3 + $0x68] ss:$16 sps:$4 sm:$0xff]   ;;  %v2264_v22 = vld [vmem:[#allocation3 + $0x84] ss:$16 sps:$4 sm:$0xff]  }
  0x52   :  { %352 = vmatpush1.bf16.msra.mxu0 %v2250_v10  ;;  %v2266_v23 = vld [vmem:[#allocation3 + $0x8c] ss:$16 sps:$4 sm:$0xff]   ;;  %v2569_v24 = vld [vmem:[#allocation9 + $0x8] sm:$0xff]  ;;  %v2269_v27 = vld [vmem:[#allocation3 + $0x88] ss:$16 sps:$4 sm:$0xff]   ;;  %s2457_s27 = smov 112  }
  0x53   :  { %405 = vmatpush1.bf16.msra.mxu1 %v2251_v11  ;;  %353 = vmatprep.subr.bf16.mxu0 %v2252_v12  ;;  %v597_v25 = vrot.slane %v2569_v24, %v2567_v19  ;;  %v2268_v26 = vld [vmem:[#allocation3 + $0x80] ss:$16 sps:$4 sm:$0xff]   ;;  %v2270_v28 = vld [vmem:[#allocation3 + $0xa4] ss:$16 sps:$4 sm:$0xff]   ;;  %v2272_v30 = vld [vmem:[#allocation3 + $0xac] ss:$16 sps:$4 sm:$0xff]  }
  0x54   :  { %406 = vmatprep.subr.bf16.mxu1 %v2254_v13  ;;  %v2573_v29 = vld [vmem:[#allocation9 + $0x18] sm:$0xff]  ;;  %v2579_v32 = vsub.s32 2, %v2564_v14  ;;  %v2275_v34 = vld [vmem:[#allocation3 + $0xa8] ss:$16 sps:$4 sm:$0xff]   ;;  %v2278_v36 = vld [vmem:[#allocation3 + $0xcc] ss:$16 sps:$4 sm:$0xff]  }
  0x55   :  { %612 = vrot.lane.b32.xlu1 %v597_v25, %s2457_s27  ;;  %v605_v31 = vrot.slane %v2573_v29, %v2567_v19  ;;  %v2274_v33 = vld [vmem:[#allocation3 + $0xa0] ss:$16 sps:$4 sm:$0xff]   ;;  %v2276_v35 = vld [vmem:[#allocation3 + $0xc4] ss:$16 sps:$4 sm:$0xff]   ;;  %v2281_v39 = vld [vmem:[#allocation3 + $0xc8] ss:$16 sps:$4 sm:$0xff]  }
  0x56   :  { %354 = vmatpush1.bf16.msra.mxu0 %v2256_v15  ;;  %v664_v37 = vrot.slane %v2569_v24, %v2579_v32  ;;  %v2280_v38 = vld [vmem:[#allocation3 + $0xc0] ss:$16 sps:$4 sm:$0xff]   ;;  %v2282_v40 = vld [vmem:[#allocation3 + $0xe4] ss:$16 sps:$4 sm:$0xff]   ;;  %vm342_vm0 = vcmask 130048   ;;  %s2458_s30 = smov 113   ;;  %v672_v43 = vrot.slane %v2573_v29, %v2579_v32 }
  0x57   :  { %407 = vmatpush1.bf16.msra.mxu1 %v2257_v16  ;;  %355 = vmatprep.subr.bf16.mxu0 %v2258_v17  ;;  %v120_v41 = vld [vmem:[%s4464_s2] sm:$0xff]  ;;  %v2284_v42 = vld [vmem:[#allocation3 + $0xec] ss:$16 sps:$4 sm:$0xff]   ;;  %v2591_v44 = vsub.s32 3, %v2564_v14  ;;  %v2287_v49 = vld [vmem:[#allocation3 + $0xe8] ss:$16 sps:$4 sm:$0xff]  }
  0x58   :  { %408 = vmatprep.subr.bf16.mxu1 %v2260_v18  ;;  %v2296_v45 = vld [vmem:[%s4463_s1 + $0x4] ss:$8 sps:$4 sm:$0xff]   ;;  %126 = vperm.xlu0 %2238, %v120_v41   ;;  %v2286_v46 = vld [vmem:[#allocation3 + $0xe0] ss:$16 sps:$4 sm:$0xff]   ;;  %v2600_v48 = vld [vmem:[#allocation9] sm:$0xff]  ;;  %v853_v58 = vsub.s32 5, %v2564_v14 }
  0x59   :  { %616 = vrot.lane.b32.xlu1 %v605_v31, %s2457_s27  ;;  %2192 = vmatprep.mubr.msk.bf16.mxu0 %vm342_vm0, %v2296_v45  ;;  %v121_v47 = vld [vmem:[%s4464_s2 + $0x8] sm:$0xff]  ;;  %v2288_v50 = vld [vmem:[#allocation3 + $0x104] ss:$16 sps:$4 sm:$0xff]   ;;  %v731_v52 = vrot.slane %v2569_v24, %v2591_v44  ;;  %v593_v53 = vrot.slane %v2600_v48, %v2567_v19  ;;  %v2292_v54 = vld [vmem:[#allocation3 + $0x100] ss:$16 sps:$4 sm:$0xff]   ;;  %s2459_s2 = smov 127   ;;  %v739_v57 = vrot.slane %v2573_v29, %v2591_v44 }
  0x5a   :  { %356 = vmatpush1.bf16.msra.mxu0 %v2262_v20  ;;  %v2290_v51 = vld [vmem:[#allocation3 + $0x10c] ss:$16 sps:$4 sm:$0xff]   ;;  %2194 = vmatprep.mubr.msk.bf16.mxu1 %vm342_vm0, %v2296_v45  ;;  %v2293_v56 = vld [vmem:[#allocation3 + $0x108] ss:$16 sps:$4 sm:$0xff]   ;;  %v858_v62 = vrot.slane %v2569_v24, %v853_v58  ;;  %v660_v63 = vrot.slane %v2600_v48, %v2579_v32  ;;  %s2460_s14 = smov 1   ;;  %v866_v1 = vrot.slane %v2573_v29, %v853_v58  ;;  %v920_v2 = vsub.s32 6, %v2564_v14 }
  0x5b   :  { %409 = vmatpush1.bf16.msra.mxu1 %v2263_v21  ;;  %357 = vmatprep.subr.bf16.mxu0 %v2264_v22  ;;  %v2608_v55 = vld [vmem:[#allocation9 + $0x10] sm:$0xff]  ;;  %v2297_v61 = vld [vmem:[%s4463_s1 + $0x14] ss:$8 sps:$4 sm:$0xff]   ;;  %v2299_v3 = vld [vmem:[%s4463_s1 + $0x10] ss:$8 sps:$4 sm:$0xff]   ;;  %v727_v6 = vrot.slane %v2600_v48, %v2591_v44  ;;  %s2461_s17 = smov 15   ;;  %v854_v12 = vrot.slane %v2600_v48, %v853_v58 }
  0x5c   :  { %410 = vmatprep.subr.bf16.mxu1 %v2266_v23  ;;  %131 = vperm.xlu0 %2238, %v121_v47   ;;  %v2294_v59 = vld [vmem:[%s4463_s1] ss:$8 sps:$4 sm:$0xff]   ;;  %v601_v60 = vrot.slane %v2608_v55, %v2567_v19  ;;  %v668_v4 = vrot.slane %v2608_v55, %v2579_v32  ;;  %v925_v5 = vrot.slane %v2569_v24, %v920_v2  ;;  %v987_v9 = vsub.s32 7, %v2564_v14  ;;  %s2462_s1 = smov 111   ;;  %s2463_s18 = smov 17  }
  0x5d   :  { %679 = vrot.lane.b32.xlu1 %v664_v37, %s2458_s30  ;;  %v933_v8 = vrot.slane %v2573_v29, %v920_v2  ;;  %v735_v10 = vrot.slane %v2608_v55, %v2591_v44  ;;  %v525_v15 = vsub.s32 0, %v2564_v14  ;;  %v862_v16 = vrot.slane %v2608_v55, %v853_v58  ;;  %v2197_v21 = vld [vmem:[#allocation9 + $0x28] ss:$0 sm:$0xff]  ;;  %v2199_v23 = vld [vmem:[#allocation9 + $0x38] ss:$0 sm:$0xff]  ;;  %s2465_s19 = smov 110  }
  0x5e   :  { %358 = vmatpush1.bf16.msra.mxu0 %v2268_v26  ;;  %v992_v11 = vrot.slane %v2569_v24, %v987_v9  ;;  %v1000_v13 = vrot.slane %v2573_v29, %v987_v9  ;;  %v921_v18 = vrot.slane %v2600_v48, %v920_v2  ;;  %v929_v20 = vrot.slane %v2608_v55, %v920_v2  ;;  %s2466_s20 = smov 96   ;;  %s2467_s3 = smov 95  }
  0x5f   :  { %411 = vmatpush1.bf16.msra.mxu1 %v2269_v27  ;;  %359 = vmatprep.subr.bf16.mxu0 %v2270_v28  ;;  %v530_v17 = vrot.slane %v2569_v24, %v525_v15  ;;  %v538_v19 = vrot.slane %v2573_v29, %v525_v15  ;;  %v988_v22 = vrot.slane %v2600_v48, %v987_v9  ;;  %v2196_v28 = vld [vmem:[#allocation9 + $0x20] ss:$0 sm:$0xff]  ;;  %s2468_s22 = smov 94   ;;  %vm618_vm1 = vcmask 916480   ;;  %s2470_s4 = smov [#allocation11]  }
  0x60   :  { %412 = vmatprep.subr.bf16.mxu1 %v2272_v30  ;;  %610 = vrot.lane.b32.xlu0 %v593_v53, %s2457_s27  ;;  %v996_v25 = vrot.slane %v2608_v55, %v987_v9  ;;  %v526_v26 = vrot.slane %v2600_v48, %v525_v15  ;;  %v534_v27 = vrot.slane %v2608_v55, %v525_v15  ;;  %v2198_v30 = vld [vmem:[#allocation9 + $0x30] ss:$0 sm:$0xff]  ;;  %vm685_vm2 = vcmask 924672   ;;  %s2141_s23 = sshll.u32 %s2470_s4, 4  ;;  %s2142_s23 = int_to_ptr.vmem [resolvable:$true] %s2141_s23 }
  0x61   :  { %683 = vrot.lane.b32.xlu1 %v672_v43, %s2458_s30  ;;  %vm752_vm3 = vcmask 1039360   ;;  %vm879_vm4 = vcmask 7168   ;;  %vm946_vm5 = vcmask 121856   ;;  %vm551_vm6 = vcmask 908288   ;;  %s2416_s24 = scalar_lea.vmem %s2142_s23, 64  ;;  %p2421_p5 = scmp.lt.s32.totalorder %s2142_s23, %s2142_s23 }
  0x62   :  { %360 = vmatpush1.bf16.msra.mxu0 %v2274_v33  ;;  %vm1079_vm7 = vcmask 138240   ;;  %vm1187_vm8 = vcmask 1031168   ;;  %vm1296_vm9 = vcmask 900096   ;;  %vm1335_vm10 = vcmask 785408   ;;  %p2417_p4 = scmp.ne.s32.totalorder %s2142_s23, %s2416_s24  ;;  %p2422_p6 = scmp.lt.s32.totalorder %s2416_s24, %s2416_s24 }
  0x63   :  { %413 = vmatpush1.bf16.msra.mxu1 %v2275_v34  ;;  %361 = vmatprep.subr.bf16.mxu0 %v2276_v35  ;;  %vm1374_vm11 = vcmask 777216   ;;  %vm1413_vm12 = vcmask 769024   ;;  %vm1776_vm13 = vcmask 261120   ;;  %vm1952_vm14 = vcmask 1040384  }
  0x64   :  { %414 = vmatprep.subr.bf16.mxu1 %v2278_v36  ;;  %614 = vrot.lane.b32.xlu0 %v601_v60, %s2457_s27  ;;  %p2423_p7 = por %p2422_p6, %p2421_p5 }
  0x65   :  { %746 = vrot.lane.b32.xlu1 %v731_v52, %s2459_s2 }
  0x66   :  { %362 = vmatpush1.bf16.msra.mxu0 %v2280_v38  ;;  %p2424_p8 = pnand %p2423_p7, %p2417_p4 }
  0x67   :  { %415 = vmatpush1.bf16.msra.mxu1 %v2281_v39  ;;  %363 = vmatprep.subr.bf16.mxu0 %v2282_v40 }
  0x68   :  { %416 = vmatprep.subr.bf16.mxu1 %v2284_v42  ;;  %677 = vrot.lane.b32.xlu0 %v660_v63, %s2458_s30 }
  0x69   :  { %750 = vrot.lane.b32.xlu1 %v739_v57, %s2459_s2 }
  0x6a   :  { %364 = vmatpush1.bf16.msra.mxu0 %v2286_v46 }
  0x6b   :  { %417 = vmatpush1.bf16.msra.mxu1 %v2287_v49  ;;  %365 = vmatprep.subr.bf16.mxu0 %v2288_v50 }
  0x6c   :  { %418 = vmatprep.subr.bf16.mxu1 %v2290_v51  ;;  %681 = vrot.lane.b32.xlu0 %v668_v4, %s2458_s30 }
  0x6d   :  { %873 = vrot.lane.b32.xlu1 %v858_v62, %s2460_s14 }
  0x6e   :  { %366 = vmatpush1.bf16.msra.mxu0 %v2292_v54 }
  0x6f   :  { %419 = vmatpush1.bf16.msra.mxu1 %v2293_v56 }
  0x70   :  { %744 = vrot.lane.b32.xlu0 %v727_v6, %s2459_s2 }
  0x71   :  { %382 = vmatmul.mubr.bf16.vlgmr.msra.gmra.mrb[0].mxu0 %v2294_v59  ;;  %877 = vrot.lane.b32.xlu1 %v866_v1, %s2460_s14 }
  0x72   :  { %435 = vmatmul.mubr.bf16.vlgmr.msra.gmra.mrb[0].mxu1 %v2294_v59  ;;  %2193 = vmatprep.mubr.msk.bf16.mxu0 %vm342_vm0, %v2297_v61 }
  0x73   :  { %2195 = vmatprep.mubr.msk.bf16.mxu1 %vm342_vm0, %v2297_v61 }
  0x74   :  { %748 = vrot.lane.b32.xlu0 %v735_v10, %s2459_s2 }
  0x75   :  { %940 = vrot.lane.b32.xlu1 %v925_v5, %s2461_s17 }
  0x78   :  { %871 = vrot.lane.b32.xlu0 %v854_v12, %s2460_s14 }
  0x79   :  { %392 = vmatmul.mubr.bf16.gmra.mrb[4].mxu0 %v2299_v3  ;;  %944 = vrot.lane.b32.xlu1 %v933_v8, %s2461_s17 }
  0x7a   :  { %445 = vmatmul.mubr.bf16.gmra.mrb[4].mxu1 %v2299_v3 }
  0x7c   :  { %875 = vrot.lane.b32.xlu0 %v862_v16, %s2460_s14 }
  0x7d   :  { %1007 = vrot.lane.b32.xlu1 %v992_v11, %s2451_s21 }
  0x80   :  { %938 = vrot.lane.b32.xlu0 %v921_v18, %s2461_s17 }
  0x81   :  { %1011 = vrot.lane.b32.xlu1 %v1000_v13, %s2451_s21 }
  0x84   :  { %942 = vrot.lane.b32.xlu0 %v929_v20, %s2461_s17 }
  0x85   :  { %545 = vrot.lane.b32.xlu1 %v530_v17, %s2462_s1 }
  0x88   :  { %1005 = vrot.lane.b32.xlu0 %v988_v22, %s2451_s21 }
  0x89   :  { %549 = vrot.lane.b32.xlu1 %v538_v19, %s2462_s1 }
  0x8c   :  { %1009 = vrot.lane.b32.xlu0 %v996_v25, %s2451_s21  ;;  %s2464_s21 = smov 126  }
  0x8d   :  { %1073 = vrot.lane.b32.xlu1 %v2197_v21, %s2463_s18  ;;  %v793_v21 = vsub.s32 4, %v2564_v14 }
  0x8f   :  { %v2757_v25 = vrot.slane %v2608_v55, %v793_v21 }
  0x90   :  { %543 = vrot.lane.b32.xlu0 %v526_v26, %s2462_s1  ;;  %v2760_v26 = vrot.slane %v2569_v24, %v793_v21 }
  0x91   :  { %1077 = vrot.lane.b32.xlu1 %v2199_v23, %s2463_s18  ;;  %v2754_v23 = vrot.slane %v2600_v48, %v793_v21 }
  0x92   :  { %4557 = vst [vmem:[#allocation21_spill] sm:$0xff] %v2760_v26 }
  0x94   :  { %547 = vrot.lane.b32.xlu0 %v534_v27, %s2462_s1  ;;  %v2763_v27 = vrot.slane %v2573_v29, %v793_v21 }
  0x96   :  { %4558 = vst [vmem:[#allocation22_spill] sm:$0xff] %v2763_v27 }
  0x98   :  { %1071 = vrot.lane.b32.xlu0 %v2196_v28, %s2463_s18 }
  0x9c   :  { %1075 = vrot.lane.b32.xlu0 %v2198_v30, %s2463_s18 }
  0xcc   :  { %v2673_v31 = vpop.permute.xlu1 %136 }
  0xd0   :  { %v2675_v32 = vpop.permute.xlu1 %141 }
  0xd4   :  { %v2677_v33 = vpop.permute.xlu1 %612 }
  0xd7   :  { %v2687_v38 = vpop.permute.xlu0 %126 }
  0xd8   :  { %v2679_v34 = vpop.permute.xlu1 %616 }
  0xdb   :  { %v2691_v40 = vpop.permute.xlu0 %131 }
  0xdc   :  { %v2681_v35 = vpop.permute.xlu1 %679 }
  0xdf   :  { %v2695_v42 = vpop.permute.xlu0 %610 }
  0xe0   :  { %v2683_v36 = vpop.permute.xlu1 %683  ;;  %v627_v43 = vmul.f32 0.0, %v2695_v42  ;;  %v2768_v28 = vsel %vm618_vm1, %v2695_v42, %v2677_v33 }
  0xe1   :  { %4553 = vst [vmem:[#allocation17_spill] sm:$0xff] %v2683_v36  ;;  %4559 = vst [vmem:[#allocation23_spill] sm:$0xff] %v2768_v28 }
  0xe2   :  { %v647_v45 = vpack.c.bf16 %v627_v43, %v627_v43 }
  0xe3   :  { %v2700_v46 = vpop.permute.xlu0 %614 }
  0xe4   :  { %v2685_v37 = vpop.permute.xlu1 %746  ;;  %1138 = vrot.lane.b32.xlu1 %v647_v45, %s2459_s2  ;;  %v2773_v30 = vsel %vm618_vm1, %v2677_v33, %v2700_v46  ;;  %v2778_v48 = vsel %vm618_vm1, %v2700_v46, %v2679_v34 }
  0xe5   :  { %4560 = vst [vmem:[#allocation24_spill] sm:$0xff] %v2778_v48 }
  0xe7   :  { %v2705_v49 = vpop.permute.xlu0 %677 }
  0xe8   :  { %v2689_v39 = vpop.permute.xlu1 %750  ;;  %v694_v50 = vmul.f32 0.0, %v2705_v49  ;;  %v2782_v24 = vsel %vm685_vm2, %v2705_v49, %v2681_v35 }
  0xe9   :  { %4554 = vst [vmem:[#allocation18_spill] sm:$0xff] %v2689_v39  ;;  %4561 = vst [vmem:[#allocation25_spill] sm:$0xff] %v2782_v24 }
  0xea   :  { %v714_v52 = vpack.c.bf16 %v694_v50, %v694_v50 }
  0xeb   :  { %v2710_v53 = vpop.permute.xlu0 %681 }
  0xec   :  { %v2693_v41 = vpop.permute.xlu1 %873  ;;  %1177 = vrot.lane.b32.xlu1 %v714_v52, %s2464_s21  ;;  %v2786_v29 = vsel %vm685_vm2, %v2681_v35, %v2710_v53  ;;  %v2790_v55 = vsel %vm685_vm2, %v2710_v53, %v2683_v36 }
  0xed   :  { %4562 = vst [vmem:[#allocation26_spill] sm:$0xff] %v2786_v29 }
  0xef   :  { %v2715_v56 = vpop.permute.xlu0 %744 }
  0xf0   :  { %v2698_v44 = vpop.permute.xlu1 %877  ;;  %v761_v58 = vmul.f32 0.0, %v2715_v56  ;;  %v2795_v33 = vsel %vm752_vm3, %v2715_v56, %v2685_v37 }
  0xf1   :  { %v892_v57 = vmul.f32 0.0, %v2698_v44 }
  0xf2   :  { %v781_v60 = vpack.c.bf16 %v761_v58, %v761_v58 }
  0xf3   :  { %v749_v61 = vpop.permute.xlu0 %748  ;;  %v912_v63 = vpack.c.bf16 %v892_v57, %v892_v57 }
  0xf4   :  { %v2703_v47 = vpop.permute.xlu1 %940  ;;  %1216 = vrot.lane.b32.xlu1 %v781_v60, %s2457_s27  ;;  %v2799_v42 = vsel %vm752_vm3, %v2685_v37, %v749_v61  ;;  %v2803_v43 = vsel %vm752_vm3, %v749_v61, %v2689_v39 }
  0xf5   :  { %4563 = vst [vmem:[#allocation27_spill] sm:$0xff] %v2799_v42 }
  0xf7   :  { %v2725_v2 = vpop.permute.xlu0 %871 }
  0xf8   :  { %v2708_v51 = vpop.permute.xlu1 %944  ;;  %4555 = vst [vmem:[#allocation19_spill] sm:$0xff] %v2725_v2  ;;  %1294 = vrot.lane.b32.xlu1 %v912_v63, %s2465_s19  ;;  %v2808_v35 = vsel %vm879_vm4, %v2725_v2, %v2693_v41 }
  0xf9   :  { %v959_v62 = vmul.f32 0.0, %v2708_v51  ;;  %4564 = vst [vmem:[#allocation28_spill] sm:$0xff] %v2808_v35 }
  0xfb   :  { %v979_v4 = vpack.c.bf16 %v959_v62, %v959_v62  ;;  %v876_v6 = vpop.permute.xlu0 %875 }
  0xfc   :  { %v2713_v54 = vpop.permute.xlu1 %1007  ;;  %v2816_v46 = vsel %vm879_vm4, %v876_v6, %v2698_v44 }
  0xfd   :  { %1333 = vrot.lane.b32.xlu1 %v979_v4, %s2466_s20  ;;  %4566 = vst [vmem:[#allocation30_spill] sm:$0xff] %v2816_v46 }
  0xff   :  { %v2734_v10 = vpop.permute.xlu0 %938 }
 0x100   :  { %v2719_v59 = vpop.permute.xlu1 %1011  ;;  %4556 = vst [vmem:[#allocation20_spill] sm:$0xff] %v2734_v10  ;;  %v2823_v50 = vsel %vm946_vm5, %v2734_v10, %v2703_v47 }
 0x101   :  { %v1025_v3 = vmul.f32 0.0, %v2719_v59  ;;  %4567 = vst [vmem:[#allocation31_spill] sm:$0xff] %v2823_v50 }
 0x103   :  { %v1045_v8 = vpack.c.bf16 %v1025_v3, %v1025_v3  ;;  %v943_v13 = vpop.permute.xlu0 %942 }
 0x104   :  { %v2723_v1 = vpop.permute.xlu1 %545 }
 0x105   :  { %1372 = vrot.lane.b32.xlu1 %v1045_v8, %s2467_s3 }
 0x107   :  { %v2741_v16 = vpop.permute.xlu0 %1005 }
 0x108   :  { %v2729_v5 = vpop.permute.xlu1 %549 }
 0x10b   :  { %v1010_v17 = vpop.permute.xlu0 %1009 }
 0x10c   :  { %v2732_v9 = vpop.permute.xlu1 %1073  ;;  %v2836_v57 = vsel %vm342_vm0, %v2713_v54, %v1010_v17 }
 0x10d   :  { %4569 = vst [vmem:[#allocation33_spill] sm:$0xff] %v2836_v57 }
 0x10f   :  { %v544_v18 = vpop.permute.xlu0 %543 }
 0x110   :  { %v2737_v11 = vpop.permute.xlu1 %1077  ;;  %v560_v19 = vmul.f32 0.0, %v544_v18 }
 0x111   :  { %v1092_v12 = vmul.f32 0.0, %v2737_v11 }
 0x112   :  { %v580_v20 = vpack.c.bf16 %v560_v19, %v560_v19 }
 0x113   :  { %v1112_v15 = vpack.c.bf16 %v1092_v12, %v1092_v12  ;;  %v548_v22 = vpop.permute.xlu0 %547 }
 0x114   :  { %1461 = vrot.lane.b32.xlu1 %v580_v20, %s2463_s18  ;;  %v2858_v12 = vsel %vm551_vm6, %v2723_v1, %v548_v22 }
 0x115   :  { %1401 = vrot.lane.b32.xlu0 %v1112_v15, %s2468_s22 }
 0x117   :  { %v2818_v37 = vpop.permute.xlu0 %1071 }
 0x119   :  { %1411 = vrot.lane.b32.xlu0 %v1112_v15, %s2468_s22 }
 0x11d   :  { %1128 = vrot.lane.b32.xlu0 %v647_v45, %s2459_s2  ;;  %v2812_v45 = vsel %vm879_vm4, %v2693_v41, %v876_v6  ;;  %v2831_v41 = vsel %vm946_vm5, %v943_v13, %v2708_v51  ;;  %v2847_v51 = vsel %vm342_vm0, %v1010_v17, %v2719_v59  ;;  %v2866_v17 = vsel %vm551_vm6, %v548_v22, %v2729_v5 }
 0x11e   :  { %4565 = vst [vmem:[#allocation29_spill] sm:$0xff] %v2812_v45  ;;  %4571 = vst [vmem:[#allocation35_spill] sm:$0xff] %v2866_v17 }
 0x121   :  { %1167 = vrot.lane.b32.xlu0 %v714_v52, %s2464_s21  ;;  %v2827_v52 = vsel %vm946_vm5, %v2703_v47, %v943_v13  ;;  %v2843_v47 = vsel %vm342_vm0, %v2741_v16, %v2713_v54 }
 0x122   :  { %4568 = vst [vmem:[#allocation32_spill] sm:$0xff] %v2827_v52 }
 0x125   :  { %1206 = vrot.lane.b32.xlu0 %v781_v60, %s2457_s27 }
 0x129   :  { %1284 = vrot.lane.b32.xlu0 %v912_v63, %s2465_s19  ;;  %v2851_v63 = vsel %vm551_vm6, %v544_v18, %v2723_v1 }
 0x12a   :  { %4570 = vst [vmem:[#allocation34_spill] sm:$0xff] %v2851_v63 }
 0x12d   :  { %1323 = vrot.lane.b32.xlu0 %v979_v4, %s2466_s20 }
 0x131   :  { %1362 = vrot.lane.b32.xlu0 %v1045_v8, %s2467_s3 }
 0x135   :  { %1451 = vrot.lane.b32.xlu0 %v580_v20, %s2463_s18 }
 0x144   :  { %v383_v49 = vpop.f32.mrb[0].mxu0 }
 0x145   :  { %v384_v53 = vadd.f32 %v383_v49, %v2687_v38  ;;  %v436_v44 = vpop.f32.mrb[0].mxu1  ;;  %v385_v56 = vpop.f32.mrb[1].mxu0 }
 0x146   :  { %v437_v58 = vadd.f32 %v436_v44, %v2687_v38  ;;  %v386_v60 = vadd.f32 %v385_v56, %v2687_v38  ;;  %v438_v61 = vpop.f32.mrb[1].mxu1  ;;  %v387_v62 = vpop.f32.mrb[2].mxu0 }
 0x147   :  { %v2853_v3 = vmax.f32 %v384_v53, 0.0  ;;  %v388_v4 = vadd.f32 %v387_v62, %v2691_v40  ;;  %v440_v6 = vpop.f32.mrb[2].mxu1  ;;  %v389_v8 = vpop.f32.mrb[3].mxu0  ;;  %v439_v19 = vadd.f32 %v438_v61, %v2687_v38 }
 0x148   :  { %v2860_v54 = vmax.f32 %v437_v58, 0.0  ;;  %v441_v13 = vadd.f32 %v440_v6, %v2691_v40  ;;  %v390_v59 = vadd.f32 %v389_v8, %v2691_v40  ;;  %v442_v15 = vpop.f32.mrb[3].mxu1  ;;  %v2868_v18 = vmax.f32 %v386_v60, 0.0  ;;  %v1076_v44 = vpop.permute.xlu0 %1075 }
 0x149   :  { %v2871_v20 = vmax.f32 %v388_v4, 0.0  ;;  %v443_v49 = vadd.f32 %v442_v15, %v2691_v40  ;;  %v628_v53 = vmul.f32 %v2768_v28, %v2853_v3  ;;  %v561_v56 = vmul.f32 %v2851_v63, %v2853_v3 }
 0x14a   :  { %v2873_v21 = vmax.f32 %v441_v13, 0.0  ;;  %v2875_v1 = vmax.f32 %v390_v59, 0.0  ;;  %v630_v58 = vmul.f32 %v2778_v48, %v2860_v54  ;;  %v563_v61 = vmul.f32 %v2866_v17, %v2860_v54 }
 0x14b   :  { %v633_v22 = vmul.f32 %v2768_v28, %v2871_v20  ;;  %v566_v38 = vmul.f32 %v2851_v63, %v2871_v20  ;;  %v700_v4 = vmul.f32 %v2782_v24, %v2871_v20  ;;  %v695_v7 = vmul.f32 %v2782_v24, %v2853_v3 }
 0x14c   :  { %v393_v60 = vpop.f32.mrb[4].mxu0  ;;  %v635_v40 = vmul.f32 %v2778_v48, %v2873_v21  ;;  %v568_v62 = vmul.f32 %v2866_v17, %v2873_v21  ;;  %v2901_v0 = vsel %vm1079_vm7, %v2732_v9, %v1076_v44  ;;  %v2906_v28 = vsel %vm1079_vm7, %v2818_v37, %v2732_v9 }
 0x14d   :  { %v394_v6 = vadd.f32 %v393_v60, %v2673_v31  ;;  %v446_v8 = vpop.f32.mrb[4].mxu1  ;;  %v395_v13 = vpop.f32.mrb[5].mxu0  ;;  %v648_v59 = vpack.c.bf16 %v633_v22, %v628_v53  ;;  %v581_v15 = vpack.c.bf16 %v566_v38, %v561_v56  ;;  %v2908_v60 = vmax.f32 %v439_v19, 0.0 }
 0x14e   :  { %v448_v14 = vpop.f32.mrb[5].mxu1  ;;  %v397_v63 = vpop.f32.mrb[6].mxu0  ;;  %v650_v48 = vpack.c.bf16 %v635_v40, %v630_v58  ;;  %v583_v17 = vpack.c.bf16 %v568_v62, %v563_v61  ;;  %v2910_v53 = vmax.f32 %v443_v49, 0.0  ;;  %v447_v22 = vadd.f32 %v446_v8, %v2673_v31 }
 0x14f   :  { %v450_v56 = vpop.f32.mrb[6].mxu1  ;;  %v399_v38 = vpop.f32.mrb[7].mxu0  ;;  %1130 = vrot.lane.b32.xlu0 %v648_v59, %s2459_s2  ;;  %1453 = vrot.lane.b32.xlu1 %v581_v15, %s2463_s18  ;;  %v715_v24 = vpack.c.bf16 %v700_v4, %v695_v7  ;;  %v2917_v58 = vsel %vm1079_vm7, %v1076_v44, %v2737_v11  ;;  %v2919_v40 = vmax.f32 %v394_v6, 0.0  ;;  %v396_v9 = vadd.f32 %v395_v13, %v2673_v31 }
 0x150   :  { %v452_v19 = vpop.f32.mrb[7].mxu1  ;;  %v629_v49 = vmul.f32 %v2773_v30, %v2868_v18  ;;  %v449_v61 = vadd.f32 %v448_v14, %v2673_v31  ;;  %v398_v62 = vadd.f32 %v397_v63, %v2675_v32  ;;  %v2927_v8 = vadd.f32 %v450_v56, %v2675_v32 }
 0x151   :  { %v634_v7 = vmul.f32 %v2773_v30, %v2875_v1  ;;  %v2932_v11 = vadd.f32 %v399_v38, %v2675_v32  ;;  %v2935_v44 = vadd.f32 %v452_v19, %v2675_v32  ;;  %v697_v4 = vmul.f32 %v2790_v55, %v2860_v54 }
 0x152   :  { %v702_v14 = vmul.f32 %v2790_v55, %v2873_v21  ;;  %v2941_v31 = vmax.f32 %v447_v22, 0.0  ;;  %v631_v6 = vmul.f32 %v2679_v34, %v2908_v60  ;;  %v636_v32 = vmul.f32 %v2679_v34, %v2910_v53 }
 0x153   :  { %1134 = vrot.lane.b32.xlu0 %v650_v48, %s2459_s2  ;;  %1457 = vrot.lane.b32.xlu1 %v583_v17, %s2463_s18  ;;  %v649_v63 = vpack.c.bf16 %v634_v7, %v629_v49  ;;  %v762_v59 = vmul.f32 %v2795_v33, %v2853_v3  ;;  %v767_v15 = vmul.f32 %v2795_v33, %v2871_v20 }
 0x154   :  { %v717_v13 = vpack.c.bf16 %v702_v14, %v697_v4  ;;  %v696_v22 = vmul.f32 %v2786_v29, %v2868_v18  ;;  %v651_v48 = vpack.c.bf16 %v636_v32, %v631_v6  ;;  %v701_v17 = vmul.f32 %v2786_v29, %v2875_v1 }
 0x155   :  { %v764_v56 = vmul.f32 %v2803_v43, %v2860_v54  ;;  %v769_v38 = vmul.f32 %v2803_v43, %v2873_v21  ;;  %v782_v19 = vpack.c.bf16 %v767_v15, %v762_v59  ;;  %v698_v49 = vmul.f32 %v2683_v36, %v2908_v60 }
 0x156   :  { %v703_v7 = vmul.f32 %v2683_v36, %v2910_v53  ;;  %v2967_v4 = vmul.f32 %v2754_v23, %v2853_v3  ;;  %v2969_v14 = vmax.f32 %v396_v9, 0.0  ;;  %v716_v6 = vpack.c.bf16 %v701_v17, %v696_v22 }
 0x157   :  { %1169 = vrot.lane.b32.xlu0 %v715_v24, %s2464_s21  ;;  %1132 = vrot.lane.b32.xlu1 %v649_v63, %s2459_s2  ;;  %v784_v32 = vpack.c.bf16 %v769_v38, %v764_v56  ;;  %v2975_v59 = vmul.f32 %v2754_v23, %v2871_v20  ;;  %v2979_v36 = vmul.f32 %v2799_v42, %v2868_v18 }
 0x158   :  { %v718_v15 = vpack.c.bf16 %v703_v7, %v698_v49  ;;  %v2983_v29 = vmul.f32 %v2799_v42, %v2875_v1  ;;  %v2987_v24 = vmul.f32 %v2757_v25, %v2860_v54  ;;  %v2993_v63 = vmul.f32 %v2757_v25, %v2873_v21 }
 0x159   :  { %v823_v9 = vpack.c.bf16 %v2975_v59, %v2967_v4  ;;  %v2997_v22 = vmul.f32 %v2689_v39, %v2908_v60  ;;  %v3001_v17 = vmul.f32 %v2689_v39, %v2910_v53  ;;  %v3007_v38 = vmul.f32 %v2725_v2, %v2853_v3 }
 0x15a   :  { %v783_v56 = vpack.c.bf16 %v2983_v29, %v2979_v36  ;;  %v3011_v49 = vmul.f32 %v2725_v2, %v2871_v20  ;;  %v3015_v7 = vmul.f32 %v2760_v26, %v2868_v18  ;;  %v3017_v4 = vmax.f32 %v449_v61, 0.0 }
 0x15b   :  { %1173 = vrot.lane.b32.xlu0 %v717_v13, %s2464_s21  ;;  %1136 = vrot.lane.b32.xlu1 %v651_v48, %s2459_s2  ;;  %v3027_v59 = vmul.f32 %v2760_v26, %v2875_v1  ;;  %v3033_v61 = vmul.f32 %v2812_v45, %v2860_v54  ;;  %v3037_v13 = vmul.f32 %v2812_v45, %v2873_v21  ;;  %v3071_v2 = vmax.f32 %v398_v62, 0.0 }
 0x15c   :  { %v3041_v48 = vmul.f32 %v2763_v27, %v2908_v60  ;;  %v3047_v36 = vmul.f32 %v2763_v27, %v2910_v53  ;;  %v3051_v39 = vmul.f32 %v2734_v10, %v2853_v3  ;;  %v3055_v26 = vmul.f32 %v2734_v10, %v2871_v20 }
 0x15d   :  { %4572 = vst [vmem:[#allocation36_spill] sm:$0xff] %v3033_v61  ;;  %v3061_v45 = vmul.f32 %v2808_v35, %v2868_v18  ;;  %v3065_v29 = vmul.f32 %v2808_v35, %v2875_v1  ;;  %v3069_v27 = vmul.f32 %v2827_v52, %v2860_v54  ;;  %v3081_v35 = vmul.f32 %v2827_v52, %v2873_v21 }
 0x15e   :  { %v3087_v62 = vmul.f32 %v2816_v46, %v2908_v60  ;;  %v3101_v42 = vmul.f32 %v2741_v16, %v2871_v20  ;;  %v3105_v61 = vmul.f32 %v2823_v50, %v2868_v18  ;;  %v3109_v52 = vmul.f32 %v2823_v50, %v2875_v1 }
 0x15f   :  { %4573 = vst [vmem:[#allocation37_spill] sm:$0xff] %v3061_v45  ;;  %4574 = vst [vmem:[#allocation38_spill] sm:$0xff] %v3069_v27  ;;  %1208 = vrot.lane.b32.xlu0 %v782_v19, %s2457_s27  ;;  %1171 = vrot.lane.b32.xlu1 %v716_v6, %s2464_s21  ;;  %v3091_v19 = vmul.f32 %v2816_v46, %v2910_v53  ;;  %v3095_v6 = vmul.f32 %v2741_v16, %v2853_v3 }
 0x160   :  { %4575 = vst [vmem:[#allocation39_spill] sm:$0xff] %v3081_v35  ;;  %4576 = vst [vmem:[#allocation40_spill] sm:$0xff] %v3087_v62  ;;  %v3115_v45 = vmul.f32 %v2836_v57, %v2860_v54  ;;  %v3119_v10 = vmul.f32 %v2836_v57, %v2873_v21  ;;  %v3123_v27 = vmul.f32 %v2831_v41, %v2908_v60  ;;  %v3126_v35 = vmax.f32 %v2927_v8, 0.0 }
 0x161   :  { %v3136_v57 = vmul.f32 %v2831_v41, %v2910_v53  ;;  %v3142_v8 = vmul.f32 %v2818_v37, %v2853_v3  ;;  %v3156_v46 = vmul.f32 %v2843_v47, %v2875_v1  ;;  %v3160_v62 = vmul.f32 %v2901_v0, %v2860_v54 }
 0x162   :  { %4577 = vst [vmem:[#allocation41_spill] sm:$0xff] %v3115_v45  ;;  %4578 = vst [vmem:[#allocation42_spill] sm:$0xff] %v3123_v27  ;;  %v3164_v3 = vmul.f32 %v2901_v0, %v2873_v21  ;;  %v3170_v45 = vmul.f32 %v2847_v51, %v2908_v60  ;;  %v3174_v50 = vmul.f32 %v2847_v51, %v2910_v53  ;;  %v3181_v54 = vmax.f32 %v2932_v11, 0.0 }
 0x163   :  { %1212 = vrot.lane.b32.xlu0 %v784_v32, %s2457_s27  ;;  %1175 = vrot.lane.b32.xlu1 %v718_v15, %s2464_s21  ;;  %4579 = vst [vmem:[#allocation43_spill] sm:$0xff] %v3142_v8  ;;  %v3146_v32 = vmul.f32 %v2818_v37, %v2871_v20  ;;  %v3150_v15 = vmul.f32 %v2843_v47, %v2868_v18 }
 0x164   :  { %4581 = vst [vmem:[#allocation45_spill] sm:$0xff] %v3170_v45  ;;  %v3178_v27 = vmul.f32 %v2858_v12, %v2868_v18  ;;  %v3191_v8 = vmul.f32 %v2858_v12, %v2875_v1  ;;  %v3197_v11 = vmul.f32 %v2906_v28, %v2868_v18  ;;  %v3211_v21 = vmul.f32 %v2729_v5, %v2910_v53 }
 0x165   :  { %4580 = vst [vmem:[#allocation44_spill] sm:$0xff] %v3146_v32  ;;  %v3215_v32 = vmul.f32 %v2917_v58, %v2908_v60  ;;  %v3219_v18 = vmul.f32 %v2917_v58, %v2910_v53  ;;  %v3225_v45 = vmul.f32 %v2754_v23, %v2919_v40  ;;  %v3229_v20 = vmul.f32 %v2754_v23, %v3071_v2 }
 0x166   :  { %4582 = vst [vmem:[#allocation46_spill] sm:$0xff] %v3178_v27  ;;  %4583 = vst [vmem:[#allocation47_spill] sm:$0xff] %v3191_v8  ;;  %v4586_v27 = vld [vmem:[#allocation23_spill] sm:$0xff]  ;;  %v4588_v53 = vpack.c.bf16 %v2993_v63, %v2987_v24  ;;  %v3258_v24 = vmul.f32 %v2757_v25, %v2941_v31  ;;  %v3262_v63 = vmul.f32 %v2757_v25, %v3126_v35 }
 0x167   :  { %1243 = vrot.lane.b32.xlu0 %v823_v9, %s2462_s1  ;;  %1210 = vrot.lane.b32.xlu1 %v783_v56, %s2457_s27  ;;  %4584 = vst [vmem:[#allocation48_spill] sm:$0xff] %v3197_v11  ;;  %v3201_v9 = vmul.f32 %v2906_v28, %v2875_v1  ;;  %v3205_v56 = vmul.f32 %v2729_v5, %v2908_v60  ;;  %v3236_v60 = vmax.f32 %v2935_v44, 0.0  ;;  %v4593_v11 = vld [vmem:[#allocation25_spill] sm:$0xff] }
 0x168   :  { %v3233_v8 = vmul.f32 %v4586_v27, %v2919_v40  ;;  %v4589_v1 = vpack.c.bf16 %v3001_v17, %v2997_v22  ;;  %v3252_v44 = vmul.f32 %v4586_v27, %v3071_v2  ;;  %4590 = vst [vmem:[#allocation50_spill] sm:$0xff] %v3258_v24  ;;  %4591 = vst [vmem:[#allocation51_spill] sm:$0xff] %v3262_v63  ;;  %v4592_v22 = vld [vmem:[#allocation24_spill] sm:$0xff] }
 0x169   :  { %4585 = vst [vmem:[#allocation49_spill] sm:$0xff] %v3201_v9  ;;  %v3266_v17 = vmul.f32 %v4592_v22, %v2941_v31  ;;  %v3272_v27 = vmul.f32 %v4592_v22, %v3126_v35  ;;  %v3280_v9 = vmul.f32 %v2818_v37, %v3071_v2  ;;  %v3286_v23 = vmul.f32 %v4593_v11, %v2919_v40 }
 0x16a   :  { %4587 = vst [vmem:[#allocation23_spill] sm:$0xff] %v3233_v8  ;;  %v3294_v22 = vmul.f32 %v2901_v0, %v2941_v31  ;;  %v4595_v25 = vpack.c.bf16 %v3027_v59, %v3015_v7  ;;  %v3310_v63 = vmul.f32 %v2901_v0, %v3126_v35  ;;  %v3324_v7 = vmul.f32 %v2773_v30, %v2969_v14 }
 0x16b   :  { %1247 = vrot.lane.b32.xlu0 %v4588_v53, %s2462_s1  ;;  %1214 = vrot.lane.b32.xlu1 %v4589_v1, %s2457_s27  ;;  %v3276_v53 = vmul.f32 %v2818_v37, %v2919_v40  ;;  %v3290_v1 = vmul.f32 %v4593_v11, %v3071_v2  ;;  %v4594_v37 = vpack.c.bf16 %v3011_v49, %v3007_v38  ;;  %v4602_v11 = vld [vmem:[#allocation36_spill] sm:$0xff] }
 0x16c   :  { %v3316_v38 = vmul.f32 %v2790_v55, %v2941_v31  ;;  %v3320_v49 = vmul.f32 %v2790_v55, %v3126_v35  ;;  %v3330_v0 = vmul.f32 %v2773_v30, %v3181_v54  ;;  %v3344_v8 = vmul.f32 %v2679_v34, %v3017_v4 }
 0x16d   :  { %v3348_v59 = vmul.f32 %v2679_v34, %v3236_v60  ;;  %v3352_v30 = vmul.f32 %v2803_v43, %v2941_v31  ;;  %v4604_v55 = vpack.c.bf16 %v3047_v36, %v3041_v48  ;;  %v4609_v48 = vld [vmem:[#allocation19_spill] sm:$0xff] }
 0x16e   :  { %4596 = vst [vmem:[#allocation24_spill] sm:$0xff] %v3316_v38  ;;  %4597 = vst [vmem:[#allocation25_spill] sm:$0xff] %v3320_v49  ;;  %v3368_v38 = vmul.f32 %v2803_v43, %v3126_v35  ;;  %v3388_v43 = vmul.f32 %v4609_v48, %v3071_v2  ;;  %v4610_v49 = vld [vmem:[#allocation17_spill] sm:$0xff] }
 0x16f   :  { %1276 = vrot.lane.b32.xlu0 %v4594_v37, %s2465_s19  ;;  %1245 = vrot.lane.b32.xlu1 %v4595_v25, %s2462_s1  ;;  %v3334_v25 = vmul.f32 %v2795_v33, %v2919_v40  ;;  %v3338_v37 = vmul.f32 %v2795_v33, %v3071_v2  ;;  %4599 = vst [vmem:[#allocation53_spill] sm:$0xff] %v3344_v8  ;;  %4600 = vst [vmem:[#allocation54_spill] sm:$0xff] %v3348_v59  ;;  %v4613_v8 = vld [vmem:[#allocation29_spill] sm:$0xff] }
 0x170   :  { %4601 = vst [vmem:[#allocation55_spill] sm:$0xff] %v3352_v30  ;;  %v4603_v33 = vpack.c.bf16 %v3037_v13, %v4602_v11  ;;  %4605 = vst [vmem:[#allocation36_spill] sm:$0xff] %v3368_v38  ;;  %v4606_v13 = vld [vmem:[#allocation26_spill] sm:$0xff]  ;;  %v3392_v34 = vmul.f32 %v4610_v49, %v3017_v4  ;;  %v3396_v24 = vmul.f32 %v4610_v49, %v3236_v60 }
 0x171   :  { %4598 = vst [vmem:[#allocation52_spill] sm:$0xff] %v3334_v25  ;;  %v3374_v11 = vmul.f32 %v4606_v13, %v2969_v14  ;;  %v3378_v36 = vmul.f32 %v4606_v13, %v3181_v54  ;;  %v3402_v59 = vmul.f32 %v4613_v8, %v2941_v31  ;;  %v4618_v49 = vpack.c.bf16 %v3055_v26, %v3051_v39  ;;  %v4619_v13 = vld [vmem:[#allocation37_spill] sm:$0xff]  ;;  %v4622_v39 = vld [vmem:[#allocation20_spill] sm:$0xff] }
 0x172   :  { %4611 = vst [vmem:[#allocation19_spill] sm:$0xff] %v3392_v34  ;;  %4612 = vst [vmem:[#allocation17_spill] sm:$0xff] %v3396_v24  ;;  %v3432_v26 = vmul.f32 %v4622_v39, %v2919_v40  ;;  %v4626_v25 = vld [vmem:[#allocation32_spill] sm:$0xff]  ;;  %v3484_v34 = vmul.f32 %v2741_v16, %v3071_v2  ;;  %v4638_v24 = vld [vmem:[#allocation31_spill] sm:$0xff] }
 0x173   :  { %1280 = vrot.lane.b32.xlu0 %v4603_v33, %s2465_s19  ;;  %1249 = vrot.lane.b32.xlu1 %v4604_v55, %s2462_s1  ;;  %4607 = vst [vmem:[#allocation26_spill] sm:$0xff] %v3374_v11  ;;  %4608 = vst [vmem:[#allocation56_spill] sm:$0xff] %v3378_v36  ;;  %v3382_v55 = vmul.f32 %v4609_v48, %v2919_v40  ;;  %v3406_v33 = vmul.f32 %v4613_v8, %v3126_v35  ;;  %v4616_v48 = vld [vmem:[#allocation27_spill] sm:$0xff] }
 0x174   :  { %4614 = vst [vmem:[#allocation29_spill] sm:$0xff] %v3402_v59  ;;  %v3410_v30 = vmul.f32 %v4616_v48, %v2969_v14  ;;  %v4620_v11 = vpack.c.bf16 %v3065_v29, %v4619_v13  ;;  %v3426_v38 = vmul.f32 %v4616_v48, %v3181_v54  ;;  %4623 = vst [vmem:[#allocation20_spill] sm:$0xff] %v3432_v26  ;;  %v4627_v59 = vld [vmem:[#allocation28_spill] sm:$0xff] }
 0x175   :  { %4615 = vst [vmem:[#allocation57_spill] sm:$0xff] %v3406_v33  ;;  %v3436_v29 = vmul.f32 %v4622_v39, %v3071_v2  ;;  %v3450_v8 = vmul.f32 %v4626_v25, %v2941_v31  ;;  %v3454_v36 = vmul.f32 %v4626_v25, %v3126_v35  ;;  %v3460_v33 = vmul.f32 %v4627_v59, %v2969_v14  ;;  %v4633_v39 = vld [vmem:[#allocation40_spill] sm:$0xff] }
 0x176   :  { %4617 = vst [vmem:[#allocation27_spill] sm:$0xff] %v3410_v30  ;;  %4621 = vst [vmem:[#allocation37_spill] sm:$0xff] %v3426_v38  ;;  %v4630_v30 = vld [vmem:[#allocation39_spill] sm:$0xff]  ;;  %v4631_v38 = vld [vmem:[#allocation38_spill] sm:$0xff]  ;;  %v4634_v26 = vpack.c.bf16 %v3091_v19, %v4633_v39 }
 0x177   :  { %1315 = vrot.lane.b32.xlu0 %v4618_v49, %s2466_s20  ;;  %1278 = vrot.lane.b32.xlu1 %v4620_v11, %s2465_s19  ;;  %4624 = vst [vmem:[#allocation58_spill] sm:$0xff] %v3436_v29  ;;  %v4625_v11 = vld [vmem:[#allocation18_spill] sm:$0xff]  ;;  %v3464_v49 = vmul.f32 %v4627_v59, %v3181_v54  ;;  %v4632_v25 = vpack.c.bf16 %v4630_v30, %v4631_v38 }
 0x178   :  { %v3440_v13 = vmul.f32 %v4625_v11, %v3017_v4  ;;  %v3446_v48 = vmul.f32 %v4625_v11, %v3236_v60  ;;  %4628 = vst [vmem:[#allocation18_spill] sm:$0xff] %v3460_v33  ;;  %v3468_v11 = vmul.f32 %v2741_v16, %v2919_v40  ;;  %v4635_v38 = vld [vmem:[#allocation30_spill] sm:$0xff]  ;;  %v3508_v59 = vmul.f32 %v4638_v24, %v2969_v14 }
 0x179   :  { %4629 = vst [vmem:[#allocation32_spill] sm:$0xff] %v3464_v49  ;;  %v3490_v30 = vmul.f32 %v4635_v38, %v3017_v4  ;;  %v3494_v19 = vmul.f32 %v4635_v38, %v3236_v60  ;;  %v3512_v29 = vmul.f32 %v4638_v24, %v3181_v54  ;;  %v4639_v33 = vld [vmem:[#allocation34_spill] sm:$0xff]  ;;  %v4641_v24 = vpack.c.bf16 %v3101_v42, %v3095_v6  ;;  %v4644_v42 = vld [vmem:[#allocation35_spill] sm:$0xff] }
 0x17a   :  { %v3518_v49 = vmul.f32 %v4639_v33, %v2919_v40  ;;  %v4642_v38 = vpack.c.bf16 %v3109_v52, %v3105_v61  ;;  %v3548_v6 = vmul.f32 %v4644_v42, %v2941_v31  ;;  %v3552_v52 = vmul.f32 %v4644_v42, %v3126_v35  ;;  %v4649_v40 = vld [vmem:[#allocation41_spill] sm:$0xff] }
 0x17b   :  { %1319 = vrot.lane.b32.xlu0 %v4632_v25, %s2466_s20  ;;  %1282 = vrot.lane.b32.xlu1 %v4634_v26, %s2465_s19  ;;  %4636 = vst [vmem:[#allocation28_spill] sm:$0xff] %v3490_v30  ;;  %v4637_v26 = vld [vmem:[#allocation33_spill] sm:$0xff]  ;;  %v3522_v25 = vmul.f32 %v4639_v33, %v3071_v2  ;;  %v3542_v33 = vmul.f32 %v2831_v41, %v3236_v60 }
 0x17c   :  { %v3498_v39 = vmul.f32 %v4637_v26, %v2941_v31  ;;  %v3504_v16 = vmul.f32 %v4637_v26, %v3126_v35  ;;  %v3526_v26 = vmul.f32 %v2831_v41, %v3017_v4  ;;  %4645 = vst [vmem:[#allocation40_spill] sm:$0xff] %v3548_v6  ;;  %4646 = vst [vmem:[#allocation30_spill] sm:$0xff] %v3552_v52  ;;  %v4651_v35 = vld [vmem:[#allocation42_spill] sm:$0xff] }
 0x17d   :  { %4643 = vst [vmem:[#allocation38_spill] sm:$0xff] %v3542_v33  ;;  %v3556_v61 = vmul.f32 %v2843_v47, %v2969_v14  ;;  %v3562_v41 = vmul.f32 %v2843_v47, %v3181_v54  ;;  %v3576_v42 = vmul.f32 %v2847_v51, %v3017_v4  ;;  %v4648_v47 = vld [vmem:[#allocation22_spill] sm:$0xff]  ;;  %v4652_v6 = vpack.c.bf16 %v3136_v57, %v4651_v35 }
 0x17e   :  { %4640 = vst [vmem:[#allocation39_spill] sm:$0xff] %v3526_v26  ;;  %v3584_v2 = vmul.f32 %v4648_v47, %v3017_v4  ;;  %v3600_v26 = vmul.f32 %v4648_v47, %v3236_v60  ;;  %v3610_v57 = vmul.f32 %v2858_v12, %v3181_v54  ;;  %v3620_v35 = vmul.f32 %v2906_v28, %v3181_v54 }
 0x17f   :  { %1354 = vrot.lane.b32.xlu0 %v4641_v24, %s2467_s3  ;;  %1317 = vrot.lane.b32.xlu1 %v4642_v38, %s2466_s20  ;;  %v4647_v24 = vld [vmem:[#allocation21_spill] sm:$0xff]  ;;  %v3580_v38 = vmul.f32 %v2847_v51, %v3236_v60  ;;  %v1047_v52 = vpack.c.bf16 %v3562_v41, %v3556_v61  ;;  %v3624_v47 = vmul.f32 %v2729_v5, %v3017_v4 }
 0x180   :  { %v3566_v30 = vmul.f32 %v4647_v24, %v2969_v14  ;;  %v3570_v31 = vmul.f32 %v4647_v24, %v3181_v54  ;;  %v4650_v24 = vpack.c.bf16 %v3119_v10, %v4649_v40  ;;  %v3606_v10 = vmul.f32 %v2858_v12, %v2969_v14  ;;  %v4654_v54 = vld [vmem:[#allocation43_spill] sm:$0xff] }
 0x181   :  { %v3614_v40 = vmul.f32 %v2906_v28, %v2969_v14  ;;  %v3634_v14 = vmul.f32 %v2917_v58, %v3017_v4  ;;  %v4653_v28 = vld [vmem:[#allocation44_spill] sm:$0xff]  ;;  %v4663_v4 = vld [vmem:[#allocation49_spill] sm:$0xff] }
 0x182   :  { %v4655_v33 = vpack.c.bf16 %v4653_v28, %v4654_v54  ;;  %v4661_v54 = vld [vmem:[#allocation46_spill] sm:$0xff] }
 0x183   :  { %1358 = vrot.lane.b32.xlu0 %v4650_v24, %s2467_s3  ;;  %1321 = vrot.lane.b32.xlu1 %v4652_v6, %s2466_s20  ;;  %v3628_v24 = vmul.f32 %v2729_v5, %v3236_v60  ;;  %v3638_v6 = vmul.f32 %v2917_v58, %v3236_v60  ;;  %v4656_v5 = vpack.c.bf16 %v3156_v46, %v3150_v15  ;;  %v4660_v15 = vld [vmem:[#allocation47_spill] sm:$0xff]  ;;  %v4664_v58 = vld [vmem:[#allocation48_spill] sm:$0xff] }
 0x184   :  { %v4657_v60 = vpack.c.bf16 %v3164_v3, %v3160_v62  ;;  %v4665_v12 = vpack.c.bf16 %v4663_v4, %v4664_v58  ;;  %v4666_v62 = vpack.c.bf16 %v3211_v21, %v3205_v56  ;;  %v4668_v3 = vpack.c.bf16 %v3229_v20, %v3225_v45  ;;  %v4671_v21 = vld [vmem:[#allocation51_spill] sm:$0xff]  ;;  %v4672_v56 = vld [vmem:[#allocation50_spill] sm:$0xff] }
 0x185   :  { %v4675_v20 = vpack.c.bf16 %v3280_v9, %v3276_v53  ;;  %v4681_v9 = vpack.c.bf16 %v3330_v0, %v3324_v7  ;;  %v4690_v0 = vld [vmem:[#allocation56_spill] sm:$0xff]  ;;  %v4727_v41 = vpack.c.bf16 %v3620_v35, %v3614_v40 }
 0x187   :  { %1393 = vrot.lane.b32.xlu0 %v4655_v33, %s2468_s22  ;;  %1356 = vrot.lane.b32.xlu1 %v4656_v5, %s2467_s3  ;;  %v4658_v33 = vld [vmem:[#allocation45_spill] sm:$0xff]  ;;  %v3662_v46 = vpop.permute.xlu0 %1401  ;;  %v4662_v5 = vpack.c.bf16 %v4660_v15, %v4661_v54 }
 0x188   :  { %v4659_v28 = vpack.c.bf16 %v3174_v50, %v4658_v33  ;;  %v4667_v50 = vpack.c.bf16 %v3219_v18, %v3215_v32  ;;  %v4674_v32 = vpack.c.bf16 %v3272_v27, %v3266_v17  ;;  %v3700_v18 = vpop.permute.xlu1 %1138  ;;  %v4677_v17 = vpack.c.bf16 %v3310_v63, %v3294_v22  ;;  %v4678_v27 = vld [vmem:[#allocation25_spill] sm:$0xff]  ;;  %v4684_v22 = vld [vmem:[#allocation54_spill] sm:$0xff] }
 0x18b   :  { %1397 = vrot.lane.b32.xlu0 %v4657_v60, %s2468_s22  ;;  %1360 = vrot.lane.b32.xlu1 %v4659_v28, %s2467_s3  ;;  %v3672_v51 = vpop.permute.xlu0 %1411  ;;  %v4673_v60 = vpack.c.bf16 %v4671_v21, %v4672_v56  ;;  %v4679_v28 = vld [vmem:[#allocation24_spill] sm:$0xff]  ;;  %v4693_v21 = vpack.c.bf16 %v3388_v43, %v3382_v55  ;;  %v4700_v55 = vld [vmem:[#allocation37_spill] sm:$0xff]  ;;  %v4701_v43 = vld [vmem:[#allocation27_spill] sm:$0xff] }
 0x18c   :  { %v3712_v33 = vpop.permute.xlu1 %1177  ;;  %v4680_v15 = vpack.c.bf16 %v4678_v27, %v4679_v28  ;;  %v4698_v27 = vld [vmem:[#allocation29_spill] sm:$0xff] }
 0x18f   :  { %1455 = vrot.lane.b32.xlu0 %v4662_v5, %s2463_s18  ;;  %1395 = vrot.lane.b32.xlu1 %v4665_v12, %s2468_s22  ;;  %v4669_v12 = vld [vmem:[#allocation23_spill] sm:$0xff]  ;;  %v3690_v58 = vpop.permute.xlu0 %1128  ;;  %v4685_v5 = vld [vmem:[#allocation53_spill] sm:$0xff] }
 0x190   :  { %v4670_v4 = vpack.c.bf16 %v3252_v44, %v4669_v12  ;;  %v4676_v44 = vpack.c.bf16 %v3290_v1, %v3286_v23  ;;  %v4682_v23 = vld [vmem:[#allocation52_spill] sm:$0xff]  ;;  %v3732_v53 = vpop.permute.xlu1 %1216 }
 0x191   :  { %v4683_v1 = vpack.c.bf16 %v3338_v37, %v4682_v23  ;;  %v4691_v37 = vld [vmem:[#allocation26_spill] sm:$0xff]  ;;  %v4702_v23 = vpack.c.bf16 %v4700_v55, %v4701_v43  ;;  %v4721_v55 = vld [vmem:[#allocation40_spill] sm:$0xff] }
 0x193   :  { %1459 = vrot.lane.b32.xlu0 %v4666_v62, %s2463_s18  ;;  %1399 = vrot.lane.b32.xlu1 %v4667_v50, %s2468_s22  ;;  %v3702_v45 = vpop.permute.xlu0 %1167  ;;  %v4686_v62 = vpack.c.bf16 %v4684_v22, %v4685_v5  ;;  %v4687_v50 = vld [vmem:[#allocation36_spill] sm:$0xff] }
 0x194   :  { %v3744_v7 = vpop.permute.xlu1 %1294  ;;  %v4704_v22 = vld [vmem:[#allocation20_spill] sm:$0xff] }
 0x197   :  { %1251 = vrot.lane.b32.xlu0 %v4668_v3, %s2462_s1  ;;  %1140 = vrot.lane.b32.xlu1 %v4670_v4, %s2459_s2  ;;  %v3722_v54 = vpop.permute.xlu0 %1206  ;;  %v4688_v3 = vld [vmem:[#allocation55_spill] sm:$0xff]  ;;  %v4692_v4 = vpack.c.bf16 %v4690_v0, %v4691_v37  ;;  %v4708_v0 = vld [vmem:[#allocation32_spill] sm:$0xff]  ;;  %v4709_v37 = vld [vmem:[#allocation18_spill] sm:$0xff] }
 0x198   :  { %v4689_v12 = vpack.c.bf16 %v4687_v50, %v4688_v3  ;;  %v4707_v50 = vpack.c.bf16 %v3454_v36, %v3450_v8  ;;  %v4712_v36 = vld [vmem:[#allocation28_spill] sm:$0xff] }
 0x199   :  { %v4713_v8 = vpack.c.bf16 %v3494_v19, %v4712_v36 }
 0x19b   :  { %1255 = vrot.lane.b32.xlu0 %v4673_v60, %s2462_s1  ;;  %1144 = vrot.lane.b32.xlu1 %v4674_v32, %s2459_s2  ;;  %v3734_v63 = vpop.permute.xlu0 %1284  ;;  %v3756_v60 = vpop.permute.xlu1 %1333  ;;  %v4694_v32 = vld [vmem:[#allocation17_spill] sm:$0xff] }
 0x19f   :  { %1403 = vrot.lane.b32.xlu0 %v4675_v20, %s2468_s22  ;;  %1179 = vrot.lane.b32.xlu1 %v4676_v44, %s2464_s21  ;;  %v3754_v56 = vpop.permute.xlu0 %1323  ;;  %v4695_v20 = vld [vmem:[#allocation19_spill] sm:$0xff] }
 0x1a0   :  { %v4696_v44 = vpack.c.bf16 %v4694_v32, %v4695_v20  ;;  %v4714_v32 = vpack.c.bf16 %v3504_v16, %v3498_v39  ;;  %v4718_v39 = vld [vmem:[#allocation39_spill] sm:$0xff] }
 0x1a3   :  { %1407 = vrot.lane.b32.xlu0 %v4677_v17, %s2468_s22  ;;  %1183 = vrot.lane.b32.xlu1 %v4680_v15, %s2464_s21  ;;  %v4697_v17 = vld [vmem:[#allocation57_spill] sm:$0xff]  ;;  %v3766_v15 = vpop.permute.xlu1 %1372 }
 0x1a4   :  { %v4699_v28 = vpack.c.bf16 %v4697_v17, %v4698_v27  ;;  %v4717_v27 = vld [vmem:[#allocation38_spill] sm:$0xff] }
 0x1a5   :  { %v4719_v16 = vpack.c.bf16 %v4717_v27, %v4718_v39 }
 0x1a7   :  { %1142 = vrot.lane.b32.xlu0 %v4681_v9, %s2459_s2  ;;  %1218 = vrot.lane.b32.xlu1 %v4683_v1, %s2457_s27  ;;  %v3768_v9 = vpop.permute.xlu0 %1362  ;;  %v4703_v1 = vld [vmem:[#allocation58_spill] sm:$0xff]  ;;  %v3786_v3 = vpop.permute.xlu1 %1461 }
 0x1a8   :  { %v4705_v5 = vpack.c.bf16 %v4703_v1, %v4704_v22  ;;  %v4724_v1 = vpack.c.bf16 %v3580_v38, %v3576_v42  ;;  %v4725_v22 = vpack.c.bf16 %v3600_v26, %v3584_v2  ;;  %v4728_v26 = vpack.c.bf16 %v3628_v24, %v3624_v47 }
 0x1a9   :  { %v4729_v2 = vpack.c.bf16 %v3638_v6, %v3634_v14 }
 0x1ab   :  { %1146 = vrot.lane.b32.xlu0 %v4686_v62, %s2459_s2  ;;  %1222 = vrot.lane.b32.xlu1 %v4689_v12, %s2457_s27  ;;  %v4706_v62 = vpack.c.bf16 %v3446_v48, %v3440_v13  ;;  %v3788_v12 = vpop.permute.xlu0 %1451 }
 0x1af   :  { %1181 = vrot.lane.b32.xlu0 %v4692_v4, %s2464_s21  ;;  %1286 = vrot.lane.b32.xlu1 %v4693_v21, %s2465_s19  ;;  %v4710_v4 = vpack.c.bf16 %v4708_v0, %v4709_v37  ;;  %v4711_v21 = vpack.c.bf16 %v3484_v34, %v3468_v11  ;;  %v4715_v34 = vpack.c.bf16 %v3512_v29, %v3508_v59 }
 0x1b0   :  { %v4716_v11 = vpack.c.bf16 %v3522_v25, %v3518_v49  ;;  %v4723_v49 = vpack.c.bf16 %v3570_v31, %v3566_v30  ;;  %v4726_v30 = vpack.c.bf16 %v3610_v57, %v3606_v10 }
 0x1b3   :  { %1185 = vrot.lane.b32.xlu0 %v4696_v44, %s2464_s21  ;;  %1290 = vrot.lane.b32.xlu1 %v4699_v28, %s2465_s19  ;;  %v4720_v28 = vld [vmem:[#allocation30_spill] sm:$0xff] }
 0x1b4   :  { %v4722_v43 = vpack.c.bf16 %v4720_v28, %v4721_v55 }
 0x1b7   :  { %1220 = vrot.lane.b32.xlu0 %v4702_v23, %s2457_s27  ;;  %1325 = vrot.lane.b32.xlu1 %v4705_v5, %s2466_s20 }
 0x1bb   :  { %1224 = vrot.lane.b32.xlu0 %v4706_v62, %s2457_s27  ;;  %1329 = vrot.lane.b32.xlu1 %v4707_v50, %s2466_s20 }
 0x1bf   :  { %1288 = vrot.lane.b32.xlu0 %v4710_v4, %s2465_s19  ;;  %1364 = vrot.lane.b32.xlu1 %v4711_v21, %s2467_s3 }
 0x1c1   :  { %v1131_v13 = vpop.permute.xlu0 %1130  ;;  %v3798_v48 = vpop.permute.xlu1 %1453 }
 0x1c2   :  { %v1149_v35 = vsel %vm752_vm3, %v3690_v58, %v1131_v13 }
 0x1c3   :  { %1292 = vrot.lane.b32.xlu0 %v4713_v8, %s2465_s19  ;;  %1368 = vrot.lane.b32.xlu1 %v4714_v32, %s2467_s3 }
 0x1c5   :  { %v1135_v20 = vpop.permute.xlu0 %1134  ;;  %v3808_v44 = vpop.permute.xlu1 %1457 }
 0x1c7   :  { %1327 = vrot.lane.b32.xlu0 %v4715_v34, %s2466_s20  ;;  %1463 = vrot.lane.b32.xlu1 %v4716_v11, %s2463_s18 }
 0x1c9   :  { %v3818_v19 = vpop.permute.xlu0 %1169  ;;  %v1133_v17 = vpop.permute.xlu1 %1132 }
 0x1ca   :  { %v1188_v62 = vsel %vm1187_vm8, %v3702_v45, %v3818_v19  ;;  %v1151_v4 = vsel %vm752_vm3, %v1133_v17, %v1135_v20  ;;  %v1150_v36 = vsel %vm752_vm3, %v1131_v13, %v1133_v17 }
 0x1cb   :  { %1331 = vrot.lane.b32.xlu0 %v4719_v16, %s2466_s20  ;;  %1467 = vrot.lane.b32.xlu1 %v4722_v43, %s2463_s18  ;;  %v1632_v43 = vsel %vm1079_vm7, %v3788_v12, %v3798_v48 }
 0x1cd   :  { %v3828_v29 = vpop.permute.xlu0 %1173  ;;  %v1137_v59 = vpop.permute.xlu1 %1136 }
 0x1ce   :  { %v1152_v34 = vsel %vm752_vm3, %v1135_v20, %v1137_v59 }
 0x1cf   :  { %1366 = vrot.lane.b32.xlu0 %v1047_v52, %s2467_s3  ;;  %1253 = vrot.lane.b32.xlu1 %v4723_v49, %s2462_s1 }
 0x1d1   :  { %v3838_v25 = vpop.permute.xlu0 %1208  ;;  %v1172_v23 = vpop.permute.xlu1 %1171 }
 0x1d2   :  { %v1227_v37 = vsel %vm618_vm1, %v3722_v54, %v3838_v25  ;;  %v1190_v8 = vsel %vm1187_vm8, %v1172_v23, %v3828_v29  ;;  %v1189_v27 = vsel %vm1187_vm8, %v3818_v19, %v1172_v23 }
 0x1d3   :  { %1370 = vrot.lane.b32.xlu0 %v4724_v1, %s2467_s3  ;;  %1257 = vrot.lane.b32.xlu1 %v4725_v22, %s2462_s1 }
 0x1d5   :  { %v3848_v61 = vpop.permute.xlu0 %1212  ;;  %v1176_v52 = vpop.permute.xlu1 %1175 }
 0x1d6   :  { %v1191_v28 = vsel %vm1187_vm8, %v3828_v29, %v1176_v52 }
 0x1d7   :  { %1465 = vrot.lane.b32.xlu0 %v4726_v30, %s2463_s18  ;;  %1405 = vrot.lane.b32.xlu1 %v4727_v41, %s2468_s22 }
 0x1d9   :  { %v3858_v38 = vpop.permute.xlu0 %1243  ;;  %v3860_v31 = vpop.permute.xlu1 %1210 }
 0x1da   :  { %v1229_v11 = vsel %vm618_vm1, %v3860_v31, %v3848_v61  ;;  %v1228_v29 = vsel %vm618_vm1, %v3838_v25, %v3860_v31 }
 0x1db   :  { %1469 = vrot.lane.b32.xlu0 %v4728_v26, %s2463_s18  ;;  %1409 = vrot.lane.b32.xlu1 %v4729_v2, %s2468_s22 }
 0x1dd   :  { %v3870_v42 = vpop.permute.xlu0 %1247  ;;  %v3872_v10 = vpop.permute.xlu1 %1214 }
 0x1de   :  { %v1230_v22 = vsel %vm618_vm1, %v3848_v61, %v3872_v10 }
 0x1df   :  { %1531 = vrot.lane.b32.xlu0 %v3858_v38, %s2463_s18  ;;  %1479 = vrot.lane.b32.xlu1 %v1137_v59, %s2463_s18 }
 0x1e1   :  { %v3877_v57 = vpop.permute.xlu0 %1276  ;;  %v3879_v40 = vpop.permute.xlu1 %1245 }
 0x1e2   :  { %v1261_v20 = vsel %vm551_vm6, %v3879_v40, %v3870_v42  ;;  %v1260_v30 = vsel %vm551_vm6, %v3858_v38, %v3879_v40 }
 0x1e3   :  { %1551 = vrot.lane.b32.xlu0 %v3877_v57, %s2463_s18  ;;  %1471 = vrot.lane.b32.xlu1 %v1149_v35, %s2463_s18 }
 0x1e5   :  { %v3886_v6 = vpop.permute.xlu0 %1280  ;;  %v3888_v47 = vpop.permute.xlu1 %1249 }
 0x1e6   :  { %v1262_v26 = vsel %vm551_vm6, %v3870_v42, %v3888_v47 }
 0x1e7   :  { %1499 = vrot.lane.b32.xlu1 %v1176_v52, %s2463_s18 }
 0x1e9   :  { %v3891_v24 = vpop.permute.xlu0 %1315  ;;  %v3893_v14 = vpop.permute.xlu1 %1278 }
 0x1ea   :  { %1571 = vrot.lane.b32.xlu0 %v3891_v24, %s2463_s18  ;;  %v1298_v55 = vsel %vm1296_vm9, %v3893_v14, %v3886_v6 }
 0x1eb   :  { %1519 = vrot.lane.b32.xlu1 %v3872_v10, %s2463_s18  ;;  %v1297_v10 = vsel %vm1296_vm9, %v3877_v57, %v3893_v14 }
 0x1ed   :  { %v3899_v58 = vpop.permute.xlu0 %1319  ;;  %v3901_v5 = vpop.permute.xlu1 %1282 }
 0x1ee   :  { %1491 = vrot.lane.b32.xlu0 %v1188_v62, %s2463_s18  ;;  %v1300_v1 = vsel %vm1296_vm9, %v3901_v5, %v3734_v63 }
 0x1ef   :  { %1539 = vrot.lane.b32.xlu1 %v3888_v47, %s2463_s18  ;;  %v1299_v47 = vsel %vm1296_vm9, %v3886_v6, %v3901_v5 }
 0x1f1   :  { %v3909_v50 = vpop.permute.xlu0 %1354  ;;  %v3911_v0 = vpop.permute.xlu1 %1317 }
 0x1f2   :  { %1511 = vrot.lane.b32.xlu0 %v1227_v37, %s2463_s18  ;;  %v1337_v63 = vsel %vm1335_vm10, %v3911_v0, %v3899_v58 }
 0x1f3   :  { %1475 = vrot.lane.b32.xlu1 %v1151_v4, %s2463_s18 }
 0x1f5   :  { %v3919_v45 = vpop.permute.xlu0 %1358  ;;  %v3921_v21 = vpop.permute.xlu1 %1321 }
 0x1f6   :  { %1473 = vrot.lane.b32.xlu0 %v1150_v36, %s2463_s18  ;;  %v1339_v61 = vsel %vm1335_vm10, %v3921_v21, %v3754_v56  ;;  %v1338_v6 = vsel %vm1335_vm10, %v3899_v58, %v3921_v21 }
 0x1f7   :  { %1495 = vrot.lane.b32.xlu1 %v1190_v8, %s2463_s18 }
 0x1f9   :  { %v3928_v54 = vpop.permute.xlu0 %1393  ;;  %v3930_v32 = vpop.permute.xlu1 %1356 }
 0x1fa   :  { %1477 = vrot.lane.b32.xlu0 %v1152_v34, %s2463_s18  ;;  %v1376_v38 = vsel %vm1374_vm11, %v3930_v32, %v3919_v45 }
 0x1fb   :  { %1515 = vrot.lane.b32.xlu1 %v1229_v11, %s2463_s18 }
 0x1fd   :  { %v3938_v13 = vpop.permute.xlu0 %1397  ;;  %v3940_v17 = vpop.permute.xlu1 %1360 }
 0x1fe   :  { %1493 = vrot.lane.b32.xlu0 %v1189_v27, %s2463_s18  ;;  %v1378_v42 = vsel %vm1374_vm11, %v3940_v17, %v3768_v9  ;;  %v1336_v9 = vsel %vm1335_vm10, %v3891_v24, %v3911_v0  ;;  %v1375_v24 = vsel %vm1374_vm11, %v3909_v50, %v3930_v32  ;;  %v1377_v58 = vsel %vm1374_vm11, %v3919_v45, %v3940_v17 }
 0x1ff   :  { %1535 = vrot.lane.b32.xlu1 %v1261_v20, %s2463_s18 }
 0x201   :  { %v1456_v39 = vpop.permute.xlu0 %1455  ;;  %v3949_v16 = vpop.permute.xlu1 %1395 }
 0x202   :  { %1497 = vrot.lane.b32.xlu0 %v1191_v28, %s2463_s18  ;;  %v1633_v19 = vsel %vm1079_vm7, %v3798_v48, %v1456_v39  ;;  %v1634_v12 = vsel %vm1079_vm7, %v1456_v39, %v3808_v44 }
 0x203   :  { %1780 = vmatprep.subr.bf16.mxu0 %v1633_v19  ;;  %1555 = vrot.lane.b32.xlu1 %v1298_v55, %s2463_s18 }
 0x204   :  { %1781 = vmatpush1.bf16.msra.mxu0 %v1632_v43 }
 0x205   :  { %v1460_v59 = vpop.permute.xlu0 %1459  ;;  %v3963_v49 = vpop.permute.xlu1 %1399 }
 0x206   :  { %1513 = vrot.lane.b32.xlu0 %v1228_v29, %s2463_s18  ;;  %v1635_v23 = vsel %vm1079_vm7, %v3808_v44, %v1460_v59 }
 0x207   :  { %1866 = vmatprep.subr.bf16.mxu1 %v1635_v23  ;;  %1559 = vrot.lane.b32.xlu1 %v1300_v1, %s2463_s18 }
 0x208   :  { %1867 = vmatpush1.bf16.msra.mxu1 %v1634_v12  ;;  %v1415_v12 = vsel %vm1413_vm12, %v3949_v16, %v3938_v13 }
 0x209   :  { %v3977_v48 = vpop.permute.xlu0 %1251  ;;  %v3979_v25 = vpop.permute.xlu1 %1140 }
 0x20a   :  { %1517 = vrot.lane.b32.xlu0 %v1230_v22, %s2463_s18  ;;  %v1153_v45 = vsel %vm752_vm3, %v3700_v18, %v3979_v25 }
 0x20b   :  { %1575 = vrot.lane.b32.xlu1 %v1337_v63, %s2463_s18 }
 0x20d   :  { %v3989_v52 = vpop.permute.xlu0 %1255  ;;  %v3991_v44 = vpop.permute.xlu1 %1144 }
 0x20e   :  { %1533 = vrot.lane.b32.xlu0 %v1260_v30, %s2463_s18 }
 0x20f   :  { %1579 = vrot.lane.b32.xlu1 %v1339_v61, %s2463_s18 }
 0x211   :  { %v4001_v41 = vpop.permute.xlu0 %1403  ;;  %v1180_v31 = vpop.permute.xlu1 %1179 }
 0x212   :  { %1537 = vrot.lane.b32.xlu0 %v1262_v26, %s2463_s18  ;;  %v1192_v27 = vsel %vm1187_vm8, %v3712_v33, %v1180_v31 }
 0x213   :  { %1595 = vrot.lane.b32.xlu1 %v1376_v38, %s2463_s18 }
 0x215   :  { %v4011_v2 = vpop.permute.xlu0 %1407  ;;  %v4013_v56 = vpop.permute.xlu1 %1183 }
 0x216   :  { %1553 = vrot.lane.b32.xlu0 %v1297_v10, %s2463_s18 }
 0x217   :  { %1599 = vrot.lane.b32.xlu1 %v1378_v42, %s2463_s18 }
 0x219   :  { %v1143_v40 = vpop.permute.xlu0 %1142  ;;  %v4023_v35 = vpop.permute.xlu1 %1218 }
 0x21a   :  { %1557 = vrot.lane.b32.xlu0 %v1299_v47, %s2463_s18  ;;  %v1231_v18 = vsel %vm618_vm1, %v3732_v53, %v4023_v35  ;;  %v1155_v55 = vsel %vm752_vm3, %v1143_v40, %v3991_v44  ;;  %v1154_v22 = vsel %vm752_vm3, %v3979_v25, %v1143_v40 }
 0x21b   :  { %1541 = vrot.lane.b32.xlu1 %v3977_v48, %s2463_s18 }
 0x21d   :  { %v1147_v57 = vpop.permute.xlu0 %1146  ;;  %v4031_v14 = vpop.permute.xlu1 %1222 }
 0x21e   :  { %1573 = vrot.lane.b32.xlu0 %v1336_v9, %s2463_s18  ;;  %v1156_v25 = vsel %vm752_vm3, %v3991_v44, %v1147_v57 }
 0x221   :  { %v4037_v62 = vpop.permute.xlu0 %1181  ;;  %v4039_v37 = vpop.permute.xlu1 %1286 }
 0x222   :  { %1577 = vrot.lane.b32.xlu0 %v1338_v6, %s2463_s18  ;;  %1561 = vrot.lane.b32.xlu1 %v4039_v37, %s2463_s18  ;;  %v1193_v53 = vsel %vm1187_vm8, %v1180_v31, %v4037_v62 }
 0x225   :  { %v1186_v5 = vpop.permute.xlu0 %1185  ;;  %v4047_v4 = vpop.permute.xlu1 %1290 }
 0x226   :  { %1593 = vrot.lane.b32.xlu0 %v1375_v24, %s2463_s18  ;;  %v1195_v26 = vsel %vm1187_vm8, %v4013_v56, %v1186_v5 }
 0x229   :  { %v4053_v0 = vpop.permute.xlu0 %1220  ;;  %v4055_v36 = vpop.permute.xlu1 %1325 }
 0x22a   :  { %1597 = vrot.lane.b32.xlu0 %v1377_v58, %s2463_s18  ;;  %1581 = vrot.lane.b32.xlu1 %v4055_v36, %s2463_s18 }
 0x22d   :  { %v1225_v21 = vpop.permute.xlu0 %1224  ;;  %v4063_v8 = vpop.permute.xlu1 %1329 }
 0x22e   :  { %1509 = vrot.lane.b32.xlu0 %v1186_v5, %s2463_s18  ;;  %1489 = vrot.lane.b32.xlu1 %v1147_v57, %s2463_s18  ;;  %v1234_v44 = vsel %vm618_vm1, %v4031_v14, %v1225_v21  ;;  %v1194_v57 = vsel %vm1187_vm8, %v4037_v62, %v4013_v56  ;;  %v1233_v62 = vsel %vm618_vm1, %v4053_v0, %v4031_v14 }
 0x22f   :  { %v1416_v14 = vsel %vm1413_vm12, %v3938_v13, %v3963_v49 }
 0x231   :  { %v4067_v32 = vpop.permute.xlu0 %1288  ;;  %v4069_v34 = vpop.permute.xlu1 %1364 }
 0x232   :  { %1529 = vrot.lane.b32.xlu0 %v1225_v21, %s2463_s18  ;;  %1481 = vrot.lane.b32.xlu1 %v1153_v45, %s2463_s18  ;;  %v1301_v24 = vsel %vm1296_vm9, %v4039_v37, %v4067_v32  ;;  %v1302_v13 = vsel %vm1296_vm9, %v4067_v32, %v4047_v4 }
 0x235   :  { %v4076_v11 = vpop.permute.xlu0 %1292  ;;  %v4078_v17 = vpop.permute.xlu1 %1368 }
 0x236   :  { %1501 = vrot.lane.b32.xlu1 %v1192_v27, %s2463_s18  ;;  %v1303_v21 = vsel %vm1296_vm9, %v4047_v4, %v4076_v11  ;;  %v1304_v4 = vsel %vm1296_vm9, %v4076_v11, %v3744_v7 }
 0x239   :  { %v4083_v20 = vpop.permute.xlu0 %1327  ;;  %v1464_v39 = vpop.permute.xlu1 %1463 }
 0x23a   :  { %1521 = vrot.lane.b32.xlu1 %v1231_v18, %s2463_s18  ;;  %v1636_v30 = vsel %vm1079_vm7, %v3786_v3, %v1464_v39  ;;  %v1232_v3 = vsel %vm618_vm1, %v4023_v35, %v4053_v0  ;;  %v1341_v7 = vsel %vm1335_vm10, %v4083_v20, %v4063_v8 }
 0x23d   :  { %v4089_v28 = vpop.permute.xlu0 %1331  ;;  %v1468_v19 = vpop.permute.xlu1 %1467 }
 0x23e   :  { %1485 = vrot.lane.b32.xlu1 %v1155_v55, %s2463_s18 }
 0x241   :  { %v4094_v33 = vpop.permute.xlu0 %1366  ;;  %v1254_v43 = vpop.permute.xlu1 %1253 }
 0x242   :  { %1601 = vrot.lane.b32.xlu1 %v4069_v34, %s2463_s18  ;;  %v1263_v9 = vsel %vm551_vm6, %v3977_v48, %v1254_v43  ;;  %v1264_v45 = vsel %vm551_vm6, %v1254_v43, %v3989_v52  ;;  %v1379_v11 = vsel %vm1374_vm11, %v4069_v34, %v4094_v33 }
 0x245   :  { %v4098_v59 = vpop.permute.xlu0 %1370  ;;  %v1258_v29 = vpop.permute.xlu1 %1257 }
 0x246   :  { %1503 = vrot.lane.b32.xlu1 %v1193_v53, %s2463_s18  ;;  %1549 = vrot.lane.b32.xlu0 %v1258_v29, %s2463_s18  ;;  %v1265_v5 = vsel %vm551_vm6, %v3989_v52, %v1258_v29 }
 0x249   :  { %v1466_v23 = vpop.permute.xlu0 %1465  ;;  %v4104_v1 = vpop.permute.xlu1 %1405 }
 0x24a   :  { %1615 = vrot.lane.b32.xlu1 %v1415_v12, %s2463_s18  ;;  %1483 = vrot.lane.b32.xlu0 %v1154_v22, %s2463_s18  ;;  %v1637_v63 = vsel %vm1079_vm7, %v1464_v39, %v1466_v23  ;;  %v1638_v10 = vsel %vm1079_vm7, %v1466_v23, %v1468_v19  ;;  %v1340_v39 = vsel %vm1335_vm10, %v4055_v36, %v4083_v20 }
 0x24b   :  { %1782 = vmatprep.subr.bf16.mxu0 %v1637_v63  ;;  %v1342_v36 = vsel %vm1335_vm10, %v4063_v8, %v4089_v28  ;;  %v1343_v63 = vsel %vm1335_vm10, %v4089_v28, %v3756_v60  ;;  %v1381_v8 = vsel %vm1374_vm11, %v4078_v17, %v4098_v59  ;;  %v1380_v60 = vsel %vm1374_vm11, %v4094_v33, %v4078_v17 }
 0x24c   :  { %1783 = vmatpush1.bf16.msra.mxu0 %v1636_v30  ;;  %v2302_v30 = vld [vmem:[#allocation6 + $0x4] ss:$12 sps:$4 sm:$0x1f]   ;;  %v1382_v17 = vsel %vm1374_vm11, %v4098_v59, %v3766_v15  ;;  %v1418_v33 = vsel %vm1413_vm12, %v4001_v41, %v4104_v1 }
 0x24d   :  { %v1470_v61 = vpop.permute.xlu0 %1469  ;;  %v4116_v31 = vpop.permute.xlu1 %1409  ;;  %1812 = vmatprep.mubr.bf16.mxu0 %v2302_v30  ;;  %1898 = vmatprep.mubr.bf16.mxu1 %v2302_v30 }
 0x24e   :  { %1507 = vrot.lane.b32.xlu1 %v1195_v26, %s2463_s18  ;;  %1487 = vrot.lane.b32.xlu0 %v1156_v25, %s2463_s18  ;;  %v1639_v38 = vsel %vm1079_vm7, %v1468_v19, %v1470_v61  ;;  %v1417_v25 = vsel %vm1413_vm12, %v3963_v49, %v3662_v46 }
 0x24f   :  { %1868 = vmatprep.subr.bf16.mxu1 %v1639_v38 }
 0x250   :  { %1869 = vmatpush1.bf16.msra.mxu1 %v1638_v10 }
 0x251   :  { %v1480_v42 = vpop.permute.xlu1 %1479  ;;  %v4129_v40 = vpop.permute.xlu0 %1531 }
 0x252   :  { %1523 = vrot.lane.b32.xlu1 %v1232_v3, %s2463_s18  ;;  %1591 = vrot.lane.b32.xlu0 %v3909_v50, %s2463_s18  ;;  %v1414_v50 = vsel %vm1413_vm12, %v3928_v54, %v3949_v16 }
 0x255   :  { %v1472_v47 = vpop.permute.xlu1 %1471  ;;  %v4141_v35 = vpop.permute.xlu0 %1551 }
 0x256   :  { %1527 = vrot.lane.b32.xlu1 %v1234_v44, %s2463_s18  ;;  %1505 = vrot.lane.b32.xlu0 %v1194_v57, %s2463_s18  ;;  %v1419_v57 = vsel %vm1413_vm12, %v4104_v1, %v4011_v2 }
 0x259   :  { %v4145_v6 = vpop.permute.xlu1 %1499 }
 0x25a   :  { %1543 = vrot.lane.b32.xlu1 %v1263_v9, %s2463_s18  ;;  %1613 = vrot.lane.b32.xlu0 %v1414_v50, %s2463_s18 }
 0x25c   :  { %v4152_v56 = vpop.permute.xlu0 %1571 }
 0x25d   :  { %v4159_v48 = vpop.permute.xlu1 %1519 }
 0x25e   :  { %1547 = vrot.lane.b32.xlu1 %v1265_v5, %s2463_s18  ;;  %1525 = vrot.lane.b32.xlu0 %v1233_v62, %s2463_s18 }
 0x260   :  { %v1492_v16 = vpop.permute.xlu0 %1491 }
 0x261   :  { %v4166_v58 = vpop.permute.xlu1 %1539 }
 0x262   :  { %1563 = vrot.lane.b32.xlu1 %v1301_v24, %s2463_s18  ;;  %1617 = vrot.lane.b32.xlu0 %v1416_v14, %s2463_s18 }
 0x264   :  { %v1512_v0 = vpop.permute.xlu0 %1511 }
 0x265   :  { %v1476_v27 = vpop.permute.xlu1 %1475 }
 0x266   :  { %1567 = vrot.lane.b32.xlu1 %v1303_v21, %s2463_s18  ;;  %1545 = vrot.lane.b32.xlu0 %v1264_v45, %s2463_s18 }
 0x268   :  { %v1474_v37 = vpop.permute.xlu0 %1473 }
 0x269   :  { %v1640_v18 = vsel %vm1079_vm7, %v1472_v47, %v1474_v37  ;;  %v4187_v19 = vpop.permute.xlu1 %1495  ;;  %v1641_v52 = vsel %vm1079_vm7, %v1474_v37, %v1476_v27 }
 0x26a   :  { %1583 = vrot.lane.b32.xlu1 %v1340_v39, %s2463_s18  ;;  %1565 = vrot.lane.b32.xlu0 %v1302_v13, %s2463_s18 }
 0x26b   :  { %1784 = vmatprep.subr.bf16.mxu0 %v1641_v52 }
 0x26c   :  { %1785 = vmatpush1.bf16.msra.mxu0 %v1640_v18  ;;  %v1478_v55 = vpop.permute.xlu0 %1477 }
 0x26d   :  { %v1642_v32 = vsel %vm1079_vm7, %v1476_v27, %v1478_v55  ;;  %v1516_v43 = vpop.permute.xlu1 %1515  ;;  %v1643_v29 = vsel %vm1079_vm7, %v1478_v55, %v1480_v42  ;;  %v1420_v42 = vsel %vm1413_vm12, %v4011_v2, %v4116_v31 }
 0x26e   :  { %1587 = vrot.lane.b32.xlu1 %v1342_v36, %s2463_s18  ;;  %1569 = vrot.lane.b32.xlu0 %v1304_v4, %s2463_s18 }
 0x26f   :  { %1870 = vmatprep.subr.bf16.mxu1 %v1643_v29 }
 0x270   :  { %1871 = vmatpush1.bf16.msra.mxu1 %v1642_v32  ;;  %v4202_v53 = vpop.permute.xlu0 %1493 }
 0x271   :  { %v4212_v23 = vsel %vm1079_vm7, %v1492_v16, %v4202_v53  ;;  %v1536_v12 = vpop.permute.xlu1 %1535 }
 0x272   :  { %1603 = vrot.lane.b32.xlu1 %v1379_v11, %s2463_s18  ;;  %1585 = vrot.lane.b32.xlu0 %v1341_v7, %s2463_s18 }
 0x274   :  { %v4216_v22 = vpop.permute.xlu0 %1497 }
 0x275   :  { %v4227_v34 = vsel %vm1079_vm7, %v4187_v19, %v4216_v22  ;;  %v1556_v20 = vpop.permute.xlu1 %1555 }
 0x276   :  { %1607 = vrot.lane.b32.xlu1 %v1381_v8, %s2463_s18  ;;  %1589 = vrot.lane.b32.xlu0 %v1343_v63, %s2463_s18  ;;  %v1649_v8 = vsel %vm1079_vm7, %v4202_v53, %v4187_v19 }
 0x278   :  { %v1514_v61 = vpop.permute.xlu0 %1513 }
 0x279   :  { %v4235_v28 = vsel %vm1079_vm7, %v1512_v0, %v1514_v61  ;;  %v4237_v26 = vpop.permute.xlu1 %1559  ;;  %v4243_v38 = vsel %vm1079_vm7, %v1514_v61, %v1516_v43 }
 0x27a   :  { %1619 = vrot.lane.b32.xlu1 %v1417_v25, %s2463_s18  ;;  %1605 = vrot.lane.b32.xlu0 %v1380_v60, %s2463_s18  ;;  %v1651_v25 = vsel %vm1079_vm7, %v4216_v22, %v4145_v6 }
 0x27c   :  { %v4247_v10 = vpop.permute.xlu0 %1517 }
 0x27d   :  { %v4257_v46 = vsel %vm1079_vm7, %v1516_v43, %v4247_v10  ;;  %v1576_v49 = vpop.permute.xlu1 %1575  ;;  %v1659_v6 = vsel %vm1079_vm7, %v4247_v10, %v4159_v48 }
 0x27e   :  { %1609 = vrot.lane.b32.xlu0 %v1382_v17, %s2463_s18  ;;  %1623 = vrot.lane.b32.xlu1 %v1418_v33, %s2463_s18 }
 0x280   :  { %v1534_v3 = vpop.permute.xlu0 %1533 }
 0x281   :  { %v4266_v15 = vsel %vm1079_vm7, %v4129_v40, %v1534_v3  ;;  %v4269_v59 = vsel %vm1079_vm7, %v1534_v3, %v1536_v12  ;;  %v4271_v44 = vpop.permute.xlu1 %1579 }
 0x282   :  { %1611 = vrot.lane.b32.xlu0 %v3928_v54, %s2463_s18  ;;  %1627 = vrot.lane.b32.xlu1 %v1420_v42, %s2463_s18  ;;  %v1421_v54 = vsel %vm1413_vm12, %v4116_v31, %v3672_v51 }
 0x284   :  { %v4276_v47 = vpop.permute.xlu0 %1537 }
 0x285   :  { %v4283_v40 = vsel %vm1079_vm7, %v1536_v12, %v4276_v47  ;;  %v1596_v9 = vpop.permute.xlu1 %1595 }
 0x286   :  { %1625 = vrot.lane.b32.xlu0 %v1419_v57, %s2463_s18  ;;  %1621 = vrot.lane.b32.xlu1 %v4001_v41, %s2463_s18 }
 0x288   :  { %v1554_v50 = vpop.permute.xlu0 %1553 }
 0x289   :  { %v4293_v62 = vsel %vm1079_vm7, %v4141_v35, %v1554_v50  ;;  %v4296_v2 = vsel %vm1079_vm7, %v1554_v50, %v1556_v20  ;;  %v4305_v5 = vpop.permute.xlu1 %1599 }
 0x28a   :  { %1629 = vrot.lane.b32.xlu0 %v1421_v54, %s2463_s18 }
 0x28c   :  { %v4299_v1 = vpop.permute.xlu0 %1557 }
 0x28d   :  { %v4303_v41 = vsel %vm1079_vm7, %v1556_v20, %v4299_v1  ;;  %v4314_v35 = vpop.permute.xlu1 %1541 }
 0x290   :  { %v1574_v16 = vpop.permute.xlu0 %1573 }
 0x291   :  { %v4309_v51 = vsel %vm1079_vm7, %v4152_v56, %v1574_v16  ;;  %v4312_v31 = vsel %vm1079_vm7, %v1574_v16, %v1576_v49 }
 0x294   :  { %v4316_v24 = vpop.permute.xlu0 %1577  ;;  %v4322_v0 = vpop.permute.xlu1 %1561 }
 0x295   :  { %v4320_v14 = vsel %vm1079_vm7, %v1576_v49, %v4316_v24 }
 0x298   :  { %v4324_v21 = vpop.permute.xlu0 %1593 }
 0x299   :  { %v4328_v45 = vsel %vm1079_vm7, %v4324_v21, %v1596_v9 }
 0x29c   :  { %v4330_v56 = vpop.permute.xlu0 %1597  ;;  %v4332_v27 = vpop.permute.xlu1 %1581 }
 0x29d   :  { %v4336_v37 = vsel %vm1079_vm7, %v1596_v9, %v4330_v56 }
 0x2a0   :  { %v1490_v13 = vpop.permute.xlu1 %1489  ;;  %v1510_v55 = vpop.permute.xlu0 %1509 }
 0x2a4   :  { %v1482_v39 = vpop.permute.xlu1 %1481  ;;  %v1530_v36 = vpop.permute.xlu0 %1529 }
 0x2a8   :  { %v1502_v18 = vpop.permute.xlu1 %1501 }
 0x2ac   :  { %v1522_v52 = vpop.permute.xlu1 %1521 }
 0x2b0   :  { %v1486_v4 = vpop.permute.xlu1 %1485 }
 0x2b4   :  { %v4338_v32 = vpop.permute.xlu1 %1601 }
 0x2b8   :  { %v1550_v43 = vpop.permute.xlu0 %1549  ;;  %v1504_v29 = vpop.permute.xlu1 %1503 }
 0x2b9   :  { %v1652_v42 = vsel %vm1079_vm7, %v1502_v18, %v1504_v29 }
 0x2bc   :  { %v1484_v7 = vpop.permute.xlu0 %1483  ;;  %v4340_v11 = vpop.permute.xlu1 %1615 }
 0x2bd   :  { %v1644_v12 = vsel %vm1079_vm7, %v1482_v39, %v1484_v7  ;;  %v1645_v63 = vsel %vm1079_vm7, %v1484_v7, %v1486_v4 }
 0x2be   :  { %1786 = vmatprep.subr.bf16.mxu0 %v1645_v63 }
 0x2bf   :  { %1787 = vmatpush1.bf16.msra.mxu0 %v1644_v12 }
 0x2c0   :  { %v1488_v20 = vpop.permute.xlu0 %1487  ;;  %1788 = vmatprep.subr.bf16.mxu0 %v1649_v8  ;;  %v1508_v30 = vpop.permute.xlu1 %1507 }
 0x2c1   :  { %v1646_v61 = vsel %vm1079_vm7, %v1486_v4, %v1488_v20  ;;  %v1647_v60 = vsel %vm1079_vm7, %v1488_v20, %v1490_v13  ;;  %v1655_v19 = vsel %vm1079_vm7, %v1508_v30, %v1510_v55 }
 0x2c2   :  { %1872 = vmatprep.subr.bf16.mxu1 %v1647_v60 }
 0x2c3   :  { %1789 = vmatpush1.bf16.msra.mxu0 %v4212_v23  ;;  %1873 = vmatpush1.bf16.msra.mxu1 %v1646_v61 }
 0x2c4   :  { %v4353_v17 = vpop.permute.xlu0 %1591  ;;  %1874 = vmatprep.subr.bf16.mxu1 %v1651_v25  ;;  %v1524_v33 = vpop.permute.xlu1 %1523 }
 0x2c5   :  { %v1660_v48 = vsel %vm1079_vm7, %v1522_v52, %v1524_v33 }
 0x2c7   :  { %1875 = vmatpush1.bf16.msra.mxu1 %v4227_v34 }
 0x2c8   :  { %v1506_v53 = vpop.permute.xlu0 %1505  ;;  %1876 = vmatprep.subr.bf16.mxu1 %v1655_v19  ;;  %v1528_v49 = vpop.permute.xlu1 %1527 }
 0x2c9   :  { %v1654_v3 = vsel %vm1079_vm7, %v1506_v53, %v1508_v30  ;;  %v1653_v23 = vsel %vm1079_vm7, %v1504_v29, %v1506_v53  ;;  %v1663_v57 = vsel %vm1079_vm7, %v1528_v49, %v1530_v36 }
 0x2ca   :  { %1790 = vmatprep.subr.bf16.mxu0 %v1653_v23 }
 0x2cb   :  { %1791 = vmatpush1.bf16.msra.mxu0 %v1652_v42  ;;  %1877 = vmatpush1.bf16.msra.mxu1 %v1654_v3  ;;  %v2303_v3 = vld [vmem:[#allocation6 + $0x8] ss:$12 sps:$4 sm:$0x1f]  }
 0x2cc   :  { %v4363_v22 = vpop.permute.xlu0 %1613  ;;  %1792 = vmatprep.subr.bf16.mxu0 %v4243_v38  ;;  %1878 = vmatprep.subr.bf16.mxu1 %v1659_v6  ;;  %v1544_v34 = vpop.permute.xlu1 %1543 }
 0x2cf   :  { %1793 = vmatpush1.bf16.msra.mxu0 %v4235_v28  ;;  %1879 = vmatpush1.bf16.msra.mxu1 %v4257_v46  ;;  %v1667_v28 = vsel %vm1079_vm7, %v4276_v47, %v4166_v58  ;;  %v1668_v58 = vsel %vm1079_vm7, %v4314_v35, %v1544_v34 }
 0x2d0   :  { %v1526_v9 = vpop.permute.xlu0 %1525  ;;  %1880 = vmatprep.subr.bf16.mxu1 %v1663_v57  ;;  %v1548_v50 = vpop.permute.xlu1 %1547 }
 0x2d1   :  { %v1662_v54 = vsel %vm1079_vm7, %v1526_v9, %v1528_v49  ;;  %v1661_v16 = vsel %vm1079_vm7, %v1524_v33, %v1526_v9  ;;  %v1671_v46 = vsel %vm1079_vm7, %v1548_v50, %v1550_v43 }
 0x2d2   :  { %1794 = vmatprep.subr.bf16.mxu0 %v1661_v16 }
 0x2d3   :  { %1795 = vmatpush1.bf16.msra.mxu0 %v1660_v48  ;;  %1881 = vmatpush1.bf16.msra.mxu1 %v1662_v54 }
 0x2d4   :  { %v4375_v38 = vpop.permute.xlu0 %1617  ;;  %1796 = vmatprep.subr.bf16.mxu0 %v4269_v59  ;;  %1882 = vmatprep.subr.bf16.mxu1 %v1667_v28  ;;  %v1564_v10 = vpop.permute.xlu1 %1563 }
 0x2d5   :  { %v1676_v36 = vsel %vm1079_vm7, %v4322_v0, %v1564_v10  ;;  %v1698_v61 = vsel %vm1079_vm7, %v4340_v11, %v4375_v38 }
 0x2d7   :  { %1797 = vmatpush1.bf16.msra.mxu0 %v4266_v15  ;;  %1883 = vmatpush1.bf16.msra.mxu1 %v4283_v40  ;;  %v1675_v15 = vsel %vm1079_vm7, %v4299_v1, %v4237_v26 }
 0x2d8   :  { %v1546_v13 = vpop.permute.xlu0 %1545  ;;  %1884 = vmatprep.subr.bf16.mxu1 %v1671_v46  ;;  %v1568_v39 = vpop.permute.xlu1 %1567 }
 0x2d9   :  { %v1670_v18 = vsel %vm1079_vm7, %v1546_v13, %v1548_v50  ;;  %v1669_v52 = vsel %vm1079_vm7, %v1544_v34, %v1546_v13 }
 0x2da   :  { %1798 = vmatprep.subr.bf16.mxu0 %v1669_v52 }
 0x2db   :  { %1799 = vmatpush1.bf16.msra.mxu0 %v1668_v58  ;;  %1885 = vmatpush1.bf16.msra.mxu1 %v1670_v18 }
 0x2dc   :  { %v1566_v59 = vpop.permute.xlu0 %1565  ;;  %1800 = vmatprep.subr.bf16.mxu0 %v4296_v2  ;;  %1886 = vmatprep.subr.bf16.mxu1 %v1675_v15  ;;  %v1584_v47 = vpop.permute.xlu1 %1583 }
 0x2dd   :  { %v1677_v40 = vsel %vm1079_vm7, %v1564_v10, %v1566_v59  ;;  %v1678_v26 = vsel %vm1079_vm7, %v1566_v59, %v1568_v39  ;;  %v1684_v7 = vsel %vm1079_vm7, %v4332_v27, %v1584_v47 }
 0x2df   :  { %1801 = vmatpush1.bf16.msra.mxu0 %v4293_v62  ;;  %1887 = vmatpush1.bf16.msra.mxu1 %v4303_v41  ;;  %v1683_v62 = vsel %vm1079_vm7, %v4316_v24, %v4271_v44 }
 0x2e0   :  { %v1570_v55 = vpop.permute.xlu0 %1569  ;;  %1802 = vmatprep.subr.bf16.mxu0 %v1677_v40  ;;  %v1588_v35 = vpop.permute.xlu1 %1587 }
 0x2e1   :  { %v1679_v4 = vsel %vm1079_vm7, %v1568_v39, %v1570_v55 }
 0x2e2   :  { %1888 = vmatprep.subr.bf16.mxu1 %v1679_v4 }
 0x2e3   :  { %1803 = vmatpush1.bf16.msra.mxu0 %v1676_v36  ;;  %1889 = vmatpush1.bf16.msra.mxu1 %v1678_v26 }
 0x2e4   :  { %v1586_v2 = vpop.permute.xlu0 %1585  ;;  %1804 = vmatprep.subr.bf16.mxu0 %v4312_v31  ;;  %1890 = vmatprep.subr.bf16.mxu1 %v1683_v62  ;;  %v1604_v1 = vpop.permute.xlu1 %1603 }
 0x2e5   :  { %v1685_v41 = vsel %vm1079_vm7, %v1584_v47, %v1586_v2  ;;  %v1686_v44 = vsel %vm1079_vm7, %v1586_v2, %v1588_v35 }
 0x2e7   :  { %1805 = vmatpush1.bf16.msra.mxu0 %v4309_v51  ;;  %1891 = vmatpush1.bf16.msra.mxu1 %v4320_v14  ;;  %v1691_v51 = vsel %vm1079_vm7, %v4330_v56, %v4305_v5  ;;  %v1688_v14 = vsel %vm1079_vm7, %v4353_v17, %v4324_v21  ;;  %v1692_v5 = vsel %vm1079_vm7, %v4338_v32, %v1604_v1  ;;  %v2300_v56 = vld [vmem:[#allocation6] ss:$12 sps:$4 sm:$0x1f]   ;;  %v4730_v17 = vmov 0  }
 0x2e8   :  { %v1590_v0 = vpop.permute.xlu0 %1589  ;;  %1806 = vmatprep.subr.bf16.mxu0 %v1685_v41  ;;  %v1608_v43 = vpop.permute.xlu1 %1607  ;;  %v1697_v21 = vsel %vm1079_vm7, %v4363_v22, %v4340_v11 }
 0x2e9   :  { %v1687_v29 = vsel %vm1079_vm7, %v1588_v35, %v1590_v0 }
 0x2ea   :  { %1892 = vmatprep.subr.bf16.mxu1 %v1687_v29 }
 0x2eb   :  { %1807 = vmatpush1.bf16.msra.mxu0 %v1684_v7  ;;  %1893 = vmatpush1.bf16.msra.mxu1 %v1686_v44 }
 0x2ec   :  { %v1606_v31 = vpop.permute.xlu0 %1605  ;;  %1808 = vmatprep.subr.bf16.mxu0 %v4328_v45  ;;  %1894 = vmatprep.subr.bf16.mxu1 %v1691_v51  ;;  %v1620_v24 = vpop.permute.xlu1 %1619 }
 0x2ed   :  { %v1693_v27 = vsel %vm1079_vm7, %v1604_v1, %v1606_v31  ;;  %v1694_v45 = vsel %vm1079_vm7, %v1606_v31, %v1608_v43 }
 0x2ef   :  { %1809 = vmatpush1.bf16.msra.mxu0 %v1688_v14  ;;  %1895 = vmatpush1.bf16.msra.mxu1 %v4336_v37  ;;  %v1699_v37 = vsel %vm1079_vm7, %v4375_v38, %v1620_v24 }
 0x2f0   :  { %v1610_v12 = vpop.permute.xlu0 %1609  ;;  %1810 = vmatprep.subr.bf16.mxu0 %v1693_v27  ;;  %v1624_v63 = vpop.permute.xlu1 %1623 }
 0x2f1   :  { %v1695_v8 = vsel %vm1079_vm7, %v1608_v43, %v1610_v12 }
 0x2f2   :  { %1896 = vmatprep.subr.bf16.mxu1 %v1695_v8 }
 0x2f3   :  { %1811 = vmatpush1.bf16.msra.mxu0 %v1692_v5  ;;  %1897 = vmatpush1.bf16.msra.mxu1 %v1694_v45 }
 0x2f4   :  { %v1612_v20 = vpop.permute.xlu0 %1611  ;;  %1823 = vmatprep.subr.bf16.mxu0 %v1697_v21  ;;  %1909 = vmatprep.subr.bf16.mxu1 %v1699_v37  ;;  %v1628_v30 = vpop.permute.xlu1 %1627 }
 0x2f5   :  { %v1696_v32 = vsel %vm1079_vm7, %v1612_v20, %v4363_v22 }
 0x2f6   :  { %1813 = vmatmul.mubr.bf16.vlgmr.msra.gmra.mrb[8].mxu0 %v2300_v56  ;;  %1899 = vmatmul.mubr.bf16.vlgmr.msra.gmra.mrb[8].mxu1 %v2300_v56 }
 0x2f7   :  { %1824 = vmatpush1.bf16.msra.mxu0 %v1696_v32  ;;  %1910 = vmatpush1.bf16.msra.mxu1 %v1698_v61 }
 0x2f8   :  { %v1626_v60 = vpop.permute.xlu0 %1625  ;;  %v1622_v25 = vpop.permute.xlu1 %1621  ;;  %1855 = vmatprep.mubr.bf16.mxu0 %v4730_v17  ;;  %1941 = vmatprep.mubr.bf16.mxu1 %v4730_v17 }
 0x2f9   :  { %v1700_v33 = vsel %vm1079_vm7, %v1622_v25, %v1624_v63  ;;  %v1701_v19 = vsel %vm1079_vm7, %v1624_v63, %v1626_v60  ;;  %v1702_v11 = vsel %vm1079_vm7, %v1626_v60, %v1628_v30 }
 0x2fa   :  { %1825 = vmatprep.subr.bf16.mxu0 %v1701_v19 }
 0x2fb   :  { %1826 = vmatpush1.bf16.msra.mxu0 %v1700_v33 }
 0x2fc   :  { %v1630_v53 = vpop.permute.xlu0 %1629 }
 0x2fd   :  { %v1703_v49 = vsel %vm1079_vm7, %v1628_v30, %v1630_v53 }
 0x2fe   :  { %1911 = vmatprep.subr.bf16.mxu1 %v1703_v49 }
 0x2ff   :  { %1912 = vmatpush1.bf16.msra.mxu1 %v1702_v11 }
 0x302   :  { %2203 = vmatmul.mubr.msk.bf16.vlgmr.msra.gmra.mrb[8].mxu0 %vm1776_vm13, %v2303_v3  ;;  %2204 = vmatmul.mubr.msk.bf16.vlgmr.msra.gmra.mrb[8].mxu1 %vm1776_vm13, %v2303_v3 }
 0x3d5   :  { %v1857_v23 = vpop.f32.mrb[8].mxu0  ;;  %v1943_v42 = vpop.f32.mrb[8].mxu1 }
 0x3d6   :  { %v1859_v6 = vpop.f32.mrb[9].mxu0  ;;  %v1945_v22 = vpop.f32.mrb[9].mxu1 }
 0x3d7   :  { %v1861_v34 = vpop.f32.mrb[10].mxu0  ;;  %v1947_v57 = vpop.f32.mrb[10].mxu1 }
 0x3d8   :  { %v1953_v9 = vsel %vm1952_vm14, %v1861_v34, -inf  ;;  %v1969_v50 = vsel %vm1952_vm14, %v1947_v57, -inf  ;;  %v1863_v54 = vpop.f32.mrb[11].mxu0  ;;  %v1949_v16 = vpop.f32.mrb[11].mxu1 }
 0x3d9   :  { %v1954_v48 = vmax.f32 %v1857_v23, %v1953_v9  ;;  %v1970_v28 = vmax.f32 %v1943_v42, %v1969_v50  ;;  %v1961_v38 = vsel %vm1952_vm14, %v1863_v54, -inf  ;;  %v1977_v10 = vsel %vm1952_vm14, %v1949_v16, -inf }
 0x3da   :  { %v1962_v46 = vmax.f32 %v1859_v6, %v1961_v38  ;;  %v1978_v13 = vmax.f32 %v1945_v22, %v1977_v10 }
 0x3db   :  { %v1955_v39 = vrot.slane %v1954_v48, 4  ;;  %v1971_v18 = vrot.slane %v1970_v28, 4 }
 0x3dc   :  { %v1963_v52 = vrot.slane %v1962_v46, 4  ;;  %v1979_v58 = vrot.slane %v1978_v13, 4 }
 0x3dd   :  { %v1956_v15 = vmax.f32 %v1954_v48, %v1955_v39  ;;  %v1972_v59 = vmax.f32 %v1970_v28, %v1971_v18 }
 0x3de   :  { %v1964_v47 = vmax.f32 %v1962_v46, %v1963_v52  ;;  %v1980_v40 = vmax.f32 %v1978_v13, %v1979_v58 }
 0x3df   :  { %v1957_v55 = vrot.slane %v1956_v15, 2  ;;  %v1973_v35 = vrot.slane %v1972_v59, 2 }
 0x3e0   :  { %v1965_v4 = vrot.slane %v1964_v47, 2  ;;  %v1981_v36 = vrot.slane %v1980_v40, 2 }
 0x3e1   :  { %v1958_v26 = vmax.f32 %v1956_v15, %v1957_v55  ;;  %v1974_v62 = vmax.f32 %v1972_v59, %v1973_v35 }
 0x3e2   :  { %v1966_v2 = vmax.f32 %v1964_v47, %v1965_v4  ;;  %v1982_v1 = vmax.f32 %v1980_v40, %v1981_v36 }
 0x3e3   :  { %v1959_v41 = vrot.slane %v1958_v26, 1  ;;  %v1975_v0 = vrot.slane %v1974_v62, 1 }
 0x3e4   :  { %v1967_v43 = vrot.slane %v1966_v2, 1  ;;  %v1983_v29 = vrot.slane %v1982_v1, 1 }
 0x3e5   :  { %v1960_v7 = vmax.f32 %v1958_v26, %v1959_v41  ;;  %v1976_v44 = vmax.f32 %v1974_v62, %v1975_v0  ;;  %v2053_v0 = vld [vmem:[#allocation8] sm:$0xff] }
 0x3e6   :  { %v1968_v51 = vmax.f32 %v1966_v2, %v1967_v43  ;;  %v1984_v31 = vmax.f32 %v1982_v1, %v1983_v29  ;;  %v2057_v43 = vld [vmem:[#allocation8 + $0x20] sm:$0x1] }
 0x3e7   :  { %v1985_v24 = vsub.f32 %v1857_v23, %v1960_v7  ;;  %v1989_v14 = vsub.f32 %v1861_v34, %v1960_v7  ;;  %v1987_v27 = vsub.f32 %v1943_v42, %v1976_v44  ;;  %v1991_v12 = vsub.f32 %v1947_v57, %v1976_v44 }
 0x3e8   :  { %v1986_v63 = vsub.f32 %v1859_v6, %v1968_v51  ;;  %v1990_v8 = vsub.f32 %v1863_v54, %v1968_v51  ;;  %v1988_v5 = vsub.f32 %v1945_v22, %v1984_v31  ;;  %v1992_v45 = vsub.f32 %v1949_v16, %v1984_v31  ;;  %v2055_v51 = vld [vmem:[#allocation8 + $0x10] sm:$0xff] }
 0x3e9   :  { %v1993_v56 = vmul.f32 1.442695, %v1985_v24  ;;  %v2001_v21 = vmul.f32 1.442695, %v1989_v14  ;;  %v1997_v37 = vmul.f32 1.442695, %v1987_v27 }
 0x3ea   :  { %v2005_v20 = vmul.f32 1.442695, %v1991_v12  ;;  %v1995_v30 = vmul.f32 1.442695, %v1986_v63  ;;  %v2003_v32 = vmul.f32 1.442695, %v1990_v8 }
 0x3eb   :  { %2304 = vpow2.f32 %v1993_v56  ;;  %v1999_v61 = vmul.f32 1.442695, %v1988_v5  ;;  %v2007_v60 = vmul.f32 1.442695, %v1992_v45  ;;  %v2059_v31 = vld [vmem:[#allocation8 + $0x30] sm:$0x1] }
 0x3ec   :  { %2306 = vpow2.f32 %v2001_v21  ;;  %v2054_v8 = vld [vmem:[#allocation8 + $0x8] sm:$0xff] }
 0x3ed   :  { %2308 = vpow2.f32 %v1997_v37  ;;  %v2058_v37 = vld [vmem:[#allocation8 + $0x28] sm:$0x1] }
 0x3ee   :  { %2310 = vpow2.f32 %v2005_v20 }
 0x3ef   :  { %2312 = vpow2.f32 %v1995_v30 }
 0x3f0   :  { %2314 = vpow2.f32 %v2003_v32 }
 0x3f1   :  { %2316 = vpow2.f32 %v1999_v61  ;;  %v2056_v61 = vld [vmem:[#allocation8 + $0x18] sm:$0xff] }
 0x3f2   :  { %2318 = vpow2.f32 %v2007_v60  ;;  %v2060_v60 = vld [vmem:[#allocation8 + $0x38] sm:$0x1] }
 0x3f5   :  { %v2305_v25 = vpop.eup %2304 }
 0x3f6   :  { %v2307_v17 = vpop.eup %2306 }
 0x3f7   :  { %v2309_v33 = vpop.eup %2308  ;;  %v2009_v19 = vsel %vm1952_vm14, %v2307_v17, 0.0 }
 0x3f8   :  { %v2311_v53 = vpop.eup %2310  ;;  %v2010_v49 = vadd.f32 %v2305_v25, %v2009_v19 }
 0x3f9   :  { %v2313_v11 = vpop.eup %2312  ;;  %v2025_v3 = vsel %vm1952_vm14, %v2311_v53, 0.0 }
 0x3fa   :  { %v2315_v23 = vpop.eup %2314  ;;  %v2011_v42 = vrot.slane %v2010_v49, 4  ;;  %v2026_v6 = vadd.f32 %v2309_v33, %v2025_v3 }
 0x3fb   :  { %v2317_v22 = vpop.eup %2316  ;;  %v2017_v34 = vsel %vm1952_vm14, %v2315_v23, 0.0 }
 0x3fc   :  { %v2319_v57 = vpop.eup %2318  ;;  %v2012_v9 = vadd.f32 %v2011_v42, %v2010_v49  ;;  %v2027_v50 = vrot.slane %v2026_v6, 4  ;;  %v2018_v54 = vadd.f32 %v2313_v11, %v2017_v34 }
 0x3fd   :  { %v2033_v16 = vsel %vm1952_vm14, %v2319_v57, 0.0 }
 0x3fe   :  { %v2013_v48 = vrot.slane %v2012_v9, 2  ;;  %v2028_v28 = vadd.f32 %v2027_v50, %v2026_v6  ;;  %v2019_v38 = vrot.slane %v2018_v54, 4  ;;  %v2034_v10 = vadd.f32 %v2317_v22, %v2033_v16 }
 0x400   :  { %v2014_v46 = vadd.f32 %v2013_v48, %v2012_v9  ;;  %v2029_v13 = vrot.slane %v2028_v28, 2  ;;  %v2020_v39 = vadd.f32 %v2019_v38, %v2018_v54  ;;  %v2035_v18 = vrot.slane %v2034_v10, 4 }
 0x402   :  { %v2015_v52 = vrot.slane %v2014_v46, 1  ;;  %v2030_v58 = vadd.f32 %v2029_v13, %v2028_v28  ;;  %v2021_v15 = vrot.slane %v2020_v39, 2  ;;  %v2036_v59 = vadd.f32 %v2035_v18, %v2034_v10 }
 0x404   :  { %v2016_v47 = vadd.f32 %v2015_v52, %v2014_v46  ;;  %v2031_v40 = vrot.slane %v2030_v58, 1  ;;  %v2022_v55 = vadd.f32 %v2021_v15, %v2020_v39  ;;  %v2037_v35 = vrot.slane %v2036_v59, 2 }
 0x405   :  { %v2469_v46 = vmov 1966171168  }
 0x406   :  { %2320 = vrcp.f32 %v2016_v47  ;;  %v2032_v4 = vadd.f32 %v2031_v40, %v2030_v58  ;;  %v2023_v36 = vrot.slane %v2022_v55, 1  ;;  %v2038_v26 = vadd.f32 %v2037_v35, %v2036_v59 }
 0x407   :  { %v2108_v13 = vunpack.c.l.s4 %v2469_v46 }
 0x408   :  { %2322 = vrcp.f32 %v2032_v4  ;;  %v2024_v62 = vadd.f32 %v2023_v36, %v2022_v55  ;;  %v2039_v2 = vrot.slane %v2038_v26, 1 }
 0x409   :  { %v2109_v40 = vunpack.c.0.s8 %v2108_v13 }
 0x40a   :  { %2324 = vrcp.f32 %v2024_v62  ;;  %v2040_v1 = vadd.f32 %v2039_v2, %v2038_v26  ;;  %v4731_v2 = vld [vmem:[#allocation16_spill] sm:$0xff] }
 0x40c   :  { %2326 = vrcp.f32 %v2040_v1  ;;  %v2112_v1 = vsub.s32 %v2109_v40, %v4731_v2 }
 0x410   :  { %v2321_v41 = vpop.eup %2320 }
 0x411   :  { %v2042_v29 = vmul.f32 %v2321_v41, %v2305_v25  ;;  %v2049_v7 = vmul.f32 %v2321_v41, %v2307_v17 }
 0x412   :  { %v2323_v44 = vpop.eup %2322 }
 0x413   :  { %v2061_v24 = vmul.f32 %v2053_v0, %v2042_v29  ;;  %v2065_v14 = vmul.f32 %v2057_v43, %v2049_v7  ;;  %v2046_v27 = vmul.f32 %v2323_v44, %v2309_v33  ;;  %v2051_v12 = vmul.f32 %v2323_v44, %v2311_v53 }
 0x414   :  { %v2325_v63 = vpop.eup %2324 }
 0x415   :  { %v2069_v5 = vsel %vm1952_vm14, %v2065_v14, 0.0  ;;  %v2063_v45 = vmul.f32 %v2055_v51, %v2046_v27  ;;  %v2067_v56 = vmul.f32 %v2059_v31, %v2051_v12  ;;  %v2044_v21 = vmul.f32 %v2325_v63, %v2313_v11 }
 0x416   :  { %v2327_v20 = vpop.eup %2326  ;;  %v2070_v30 = vadd.f32 %v2069_v5, %v2061_v24  ;;  %v2050_v32 = vmul.f32 %v2325_v63, %v2315_v23  ;;  %v4732_v51 = vlaneseq }
 0x417   :  { %v2085_v25 = vsel %vm1952_vm14, %v2067_v56, 0.0  ;;  %v2062_v17 = vmul.f32 %v2054_v8, %v2044_v21  ;;  %v2048_v19 = vmul.f32 %v2327_v20, %v2317_v22  ;;  %v2052_v49 = vmul.f32 %v2327_v20, %v2319_v57 }
 0x418   :  { %v2086_v33 = vadd.f32 %v2085_v25, %v2063_v45  ;;  %v2066_v53 = vmul.f32 %v2058_v37, %v2050_v32  ;;  %v2071_v3 = vrot.slane %v2070_v30, 4  ;;  %vm2132_vm15 = vcmp.lt.s32.totalorder %v4732_v51, 512 }
 0x419   :  { %v2064_v42 = vmul.f32 %v2056_v61, %v2048_v19  ;;  %v2068_v6 = vmul.f32 %v2060_v60, %v2052_v49 }
 0x41a   :  { %v2077_v34 = vsel %vm1952_vm14, %v2066_v53, 0.0  ;;  %v2072_v9 = vadd.f32 %v2071_v3, %v2070_v30  ;;  %v2087_v11 = vrot.slane %v2086_v33, 4 }
 0x41b   :  { %v2078_v50 = vadd.f32 %v2077_v34, %v2062_v17  ;;  %v2093_v54 = vsel %vm1952_vm14, %v2068_v6, 0.0 }
 0x41c   :  { %v2094_v23 = vadd.f32 %v2093_v54, %v2064_v42  ;;  %v2073_v16 = vrot.slane %v2072_v9, 2  ;;  %v2088_v48 = vadd.f32 %v2087_v11, %v2086_v33 }
 0x41d   :  { %v2079_v28 = vrot.slane %v2078_v50, 4 }
 0x41e   :  { %v2095_v38 = vrot.slane %v2094_v23, 4  ;;  %v2074_v10 = vadd.f32 %v2073_v16, %v2072_v9  ;;  %v2089_v22 = vrot.slane %v2088_v48, 2 }
 0x41f   :  { %v2080_v57 = vadd.f32 %v2079_v28, %v2078_v50 }
 0x420   :  { %v2090_v39 = vadd.f32 %v2089_v22, %v2088_v48  ;;  %v2096_v18 = vadd.f32 %v2095_v38, %v2094_v23  ;;  %v2075_v52 = vrot.slane %v2074_v10, 1 }
 0x421   :  { %v2081_v58 = vrot.slane %v2080_v57, 2 }
 0x422   :  { %v2091_v15 = vrot.slane %v2090_v39, 1  ;;  %v2097_v59 = vrot.slane %v2096_v18, 2  ;;  %v2076_v35 = vadd.f32 %v2075_v52, %v2074_v10 }
 0x423   :  { %v2082_v47 = vadd.f32 %v2081_v58, %v2080_v57 }
 0x424   :  { %v2098_v55 = vadd.f32 %v2097_v59, %v2096_v18  ;;  %v2092_v36 = vadd.f32 %v2091_v15, %v2090_v39 }
 0x425   :  { %v2083_v4 = vrot.slane %v2082_v47, 1 }
 0x426   :  { %v2099_v26 = vrot.slane %v2098_v55, 1 }
 0x427   :  { %v2084_v62 = vadd.f32 %v2083_v4, %v2082_v47 }
 0x428   :  { %v2100_v41 = vadd.f32 %v2099_v26, %v2098_v55 }
 0x429   :  { %v2105_v0 = vcombine.low %v2076_v35, %v2084_v62 }
 0x42a   :  { %v2106_v43 = vcombine.low %v2092_v36, %v2100_v41 }
 0x42b   :  { %v2113_v29 = vrot.slane %v2105_v0, %v2112_v1 }
 0x42c   :  { %v2120_v7 = vrot.slane %v2106_v43, %v2112_v1 }
 0x42e   :  { %v2121_v44 = vcombine.low %v2113_v29, %v2120_v7 }
 0x430   :  { %v2128_v31 = vrot.slane %v2121_v44, %v2112_v1 }
 0x432   :  { %2134 = vst.msk [vmem:[#allocation11] sm:$0xf] %vm2132_vm15, %v2128_v31 }
 0x433   :  { %2427 = shalt.err (!%p2424_p8)
}
 0x434   :  { %s2428_s26 = scalar_lea.hbm %s4468_s6, 64 }
 0x435   :  { %p2429_p9 = scmp.ne.s32.totalorder %s4468_s6, %s2428_s26  ;;  %p2432_p10 = scmp.lt.u32.totalorder %s2428_s26, %s4468_s6 }
 0x437   :  { %p2434_p11 = pnand %p2432_p10, %p2429_p9 }
 0x439   :  { %2437 = shalt.err (!%p2434_p11)
}
 0x43a   :  { %2144 = dma.vmem_to_hbm [thread:$0]  %s2142_s23, 64, %s4468_s6, [#allocation5]  }
 0x43b   :  { %2444 = dma.done.wait [#allocation5], 64  }
 0x43c   :  { %2445 = vsyncadd [#allocation5], 4294967232 }
 0x43d   :  { %2148 = vsyncpa [#allocation4], 1 }
 0x43e   :  { %2149 = vsyncpa [#allocation7], 1 }
 0x43f   :  { %2150 = vsyncpa [#allocation10], 1 }
 0x440   :  { %2151 = vsyncpa [#allocation5], 1 }

</bundles_post_ra>
